<compile_context>
chip_gen: v7x
topology: tpu7x:2x2x1
jax: 0.10.0
libtpu: 0.0.40
codegen_flags: <defaults>
</compile_context>

<pallas_src>
import functools

import jax
import jax.numpy as jnp
from jax.experimental import pallas as pl
from jax.experimental.pallas import tpu as pltpu


def h_swish(x):
  return x * jnp.clip(x + 3.0, 0.0, 6.0) * (1.0 / 6.0)


def _inverted_residual_kernel(*refs, NB, H, W, Cin, hidden, oup, k, stride, pad,
                              identity, use_hs, PT, PB):
  del Cin, oup  # carried by the refs
  if stride > 1:
    (x_ref, w1_ref, b1_ref, wdw_ref, b2_ref, w3_ref, b3_ref, cm_ref,
     sel_ref, o_ref, tpad_ref) = refs
  else:
    (x_ref, w1_ref, b1_ref, wdw_ref, b2_ref, w3_ref, b3_ref, cm_ref,
     o_ref, tpad_ref) = refs
    sel_ref = None

  HW = H * W
  # h-swish with its 1/6 folded into the downstream conv weights (wrapper side).
  act = ((lambda v: v * jnp.clip(v + 3.0, 0.0, 6.0)) if use_hs
         else (lambda v: jnp.maximum(v, 0.0)))

  # Zero the halo rows of the padded-image scratch once per grid step; the
  # interior is fully rewritten for every image before it is read.
  tpad_ref[0:PT, :] = jnp.zeros((PT, hidden), jnp.float32)
  tpad_ref[PT + HW:PT + HW + PB, :] = jnp.zeros((PB, hidden), jnp.float32)

  # ---- 1x1 expand conv (+ folded BN1) for all NB images in one bf16 MXU pass ----
  x2 = x_ref[...].reshape(NB * HW, -1)                          # bf16, pixels on sublanes
  t = jnp.dot(x2, w1_ref[...], preferred_element_type=jnp.float32)
  t = act(t + b1_ref[...])                                      # (NB*HW, hidden) f32

  wdw = wdw_ref[...]                                            # (k*k, hidden) f32
  b2 = b2_ref[...]
  b3 = b3_ref[...]
  w3 = w3_ref[...]                                              # (hidden, oup) bf16

  for n in range(NB):                                           # static unroll, NB small
    # Write this image into the zero-padded scratch; the taps below are plain
    # sublane-shifted reads of it (no concatenates / value-relayout copies).
    tpad_ref[PT:PT + HW, :] = t[n * HW:(n + 1) * HW, :]

    # ---- depthwise kxk conv (+ folded BN2): dense stride-1 accumulation ----
    acc = jnp.zeros((HW, hidden), jnp.float32)
    for kw in range(k):
      inner = jnp.zeros((HW, hidden), jnp.float32)
      for kh in range(k):
        off = (kh - pad) * W + (kw - pad)
        win = tpad_ref[PT + off:PT + off + HW, :]
        inner = inner + win * wdw[kh * k + kw:kh * k + kw + 1, :]
      if kw != pad:
        # Zero the pixels whose shifted column (w + kw - pad) leaves its row.
        inner = inner * cm_ref[:, kw:kw + 1]
      acc = acc + inner

    if stride > 1:
      # Exact decimation to the strided output grid (selection matmul).
      acc = jnp.dot(sel_ref[...], acc, preferred_element_type=jnp.float32)

    # plug_in == 0 -> identity plug (nn.Sequential())
    u = act(acc + b2)                                           # (Hout*Wout, hidden)

    # ---- 1x1 project conv (+ folded BN3) as a bf16 MXU matmul ----
    y = jnp.dot(u.astype(jnp.bfloat16), w3,
                preferred_element_type=jnp.float32) + b3        # (Hout*Wout, oup)
    if identity:                                                # stride == 1 and inp == oup
      y = y + x2[n * HW:(n + 1) * HW, :].astype(jnp.float32)
    o_ref[n] = y.astype(o_ref.dtype)


def inverted_residual(x_nchw, w1_oihw, bn1, wdw_oihw, bn2, w3_oihw, bn3,
                      *, kernel_size, stride, use_hs, batch_block=1, eps=1e-5):
  N, Cin, H, W = x_nchw.shape
  hidden = w1_oihw.shape[0]
  oup = w3_oihw.shape[0]
  k = kernel_size
  pad = (k - 1) // 2
  Hout = (H + 2 * pad - k) // stride + 1
  Wout = (W + 2 * pad - k) // stride + 1
  HW, Qout = H * W, Hout * Wout
  identity = (stride == 1 and Cin == oup)
  NB = batch_block
  assert N % NB == 0, "batch_block must divide the batch size"

  def fold(p):
    g, b, m, v = p
    s = g / jnp.sqrt(v + eps)
    return s, b - m * s

  s1, b1 = fold(bn1)
  s2, b2 = fold(bn2)
  s3, b3 = fold(bn3)

  act_scale = (1.0 / 6.0) if use_hs else 1.0   # h-swish's 1/6, folded downstream

  # Fold BN scales (and the 1/6) into the conv weights; matmul weights go bf16.
  w1f = (w1_oihw[:, :, 0, 0].T * s1[None, :]).astype(jnp.bfloat16)            # (Cin, hidden)
  wdwf = (jnp.transpose(wdw_oihw[:, 0], (1, 2, 0)).reshape(k * k, hidden)
          * (s2 * act_scale)[None, :]).astype(jnp.float32)                    # (k*k, hidden)
  w3f = (w3_oihw[:, :, 0, 0].T * (s3 * act_scale)[None, :]).astype(jnp.bfloat16)  # (hidden, oup)

  b1t = b1.reshape(1, hidden).astype(jnp.float32)
  b2t = b2.reshape(1, hidden).astype(jnp.float32)
  b3t = b3.reshape(1, oup).astype(jnp.float32)

  # Per-kw column-validity mask (1.0 where the shifted pixel stays inside its row).
  wcol = jnp.arange(HW, dtype=jnp.int32) % W
  cm = jnp.stack(
      [((wcol + (kw - pad) >= 0) & (wcol + (kw - pad) < W)).astype(jnp.float32)
       for kw in range(k)], axis=1)                                            # (HW, k)

  # NHWC -> (N, H*W, Cin): pixels on the sublane axis, channels on lanes; bf16 x.
  x_flat = jnp.transpose(x_nchw, (0, 2, 3, 1)).reshape(N, HW, Cin).astype(jnp.bfloat16)

  PT = PB = ((pad * (W + 1) + 7) // 8) * 8      # scratch halo rows (sublane aligned)

  inputs = [x_flat, w1f, b1t, wdwf, b2t, w3f, b3t, cm]
  in_specs = [
      pl.BlockSpec((NB, HW, Cin), lambda b: (b, 0, 0)),
      pl.BlockSpec((Cin, hidden), lambda b: (0, 0)),
      pl.BlockSpec((1, hidden), lambda b: (0, 0)),
      pl.BlockSpec((k * k, hidden), lambda b: (0, 0)),
      pl.BlockSpec((1, hidden), lambda b: (0, 0)),
      pl.BlockSpec((hidden, oup), lambda b: (0, 0)),
      pl.BlockSpec((1, oup), lambda b: (0, 0)),
      pl.BlockSpec((HW, k), lambda b: (0, 0)),
  ]
  flops = (2 * N * HW * Cin * hidden + 2 * N * HW * k * k * hidden
           + 2 * N * Qout * hidden * oup)
  if stride > 1:
    q = jnp.arange(Qout, dtype=jnp.int32)
    src = (q // Wout) * stride * W + (q % Wout) * stride
    sel = (src[:, None] == jnp.arange(HW, dtype=jnp.int32)[None, :]).astype(jnp.float32)
    inputs.append(sel)
    in_specs.append(pl.BlockSpec((Qout, HW), lambda b: (0, 0)))
    flops += 2 * N * Qout * HW * hidden

  kernel = functools.partial(
      _inverted_residual_kernel, NB=NB, H=H, W=W, Cin=Cin, hidden=hidden, oup=oup,
      k=k, stride=stride, pad=pad, identity=identity, use_hs=use_hs, PT=PT, PB=PB)

  bytes_accessed = int(N * HW * Cin * 2 + N * Qout * oup * 4
                       + Cin * hidden * 2 + hidden * oup * 2 + k * k * hidden * 4
                       + (2 * hidden + oup) * 4)

  out_flat = pl.pallas_call(
      kernel,
      out_shape=jax.ShapeDtypeStruct((N, Qout, oup), jnp.float32),
      grid_spec=pltpu.PrefetchScalarGridSpec(
          num_scalar_prefetch=0,
          grid=(N // NB,),
          in_specs=in_specs,
          out_specs=pl.BlockSpec((NB, Qout, oup), lambda b: (b, 0, 0)),
          scratch_shapes=[pltpu.VMEM((PT + HW + PB, hidden), jnp.float32)]),
      compiler_params=pltpu.CompilerParams(dimension_semantics=("parallel",)),
      cost_estimate=pl.CostEstimate(flops=int(flops), transcendentals=0,
                                    bytes_accessed=bytes_accessed),
  )(*inputs)

  return jnp.transpose(out_flat.reshape(N, Hout, Wout, oup), (0, 3, 1, 2))


def ref_forward(x, w1, bn1, wdw, bn2, w3, bn3, *, k, stride, use_hs, eps=1e-5):
  """Pure-JAX reference mirroring PyTorch NCHW conv semantics (eval-mode BN)."""
  dn = ('NCHW', 'OIHW', 'NCHW')
  act = h_swish if use_hs else (lambda v: jnp.maximum(v, 0.0))

  def bn(y, p):
    g, b, m, v = p
    sh = (1, -1, 1, 1)
    return (y - m.reshape(sh)) / jnp.sqrt(v + eps).reshape(sh) * g.reshape(sh) + b.reshape(sh)

  pad = (k - 1) // 2
  inp, oup = x.shape[1], w3.shape[0]
  identity = (stride == 1 and inp == oup)

  t = jax.lax.conv_general_dilated(x, w1, (1, 1), 'VALID', dimension_numbers=dn)
  t = act(bn(t, bn1))
  t = jax.lax.conv_general_dilated(
      t, wdw, (stride, stride), [(pad, pad), (pad, pad)],
      dimension_numbers=dn, feature_group_count=wdw.shape[0])
  t = act(bn(t, bn2))
  t = jax.lax.conv_general_dilated(t, w3, (1, 1), 'VALID', dimension_numbers=dn)
  t = bn(t, bn3)
  if identity:
    t = t + x
  return t


if __name__ == "__main__":
  def bn_params(kk, c):
    k1, k2, k3, k4 = jax.random.split(kk, 4)
    gamma = 1.0 + 0.1 * jax.random.normal(k1, (c,), jnp.float32)
    beta = 0.1 * jax.random.normal(k2, (c,), jnp.float32)
    mean = 0.1 * jax.random.normal(k3, (c,), jnp.float32)
    var = jnp.abs(jax.random.normal(k4, (c,), jnp.float32)) + 0.5
    return gamma, beta, mean, var

  def run_case(name, key, *, N, Cin, hidden, oup, k, stride, use_hs, H, W, NB):
    ks = jax.random.split(key, 7)
    x = jax.random.normal(ks[0], (N, Cin, H, W), jnp.float32)
    # The kernel ingests bf16 activations; evaluate the reference on the same
    # bf16-rounded input so only the kernel's bf16 weight/matmul rounding remains.
    x = x.astype(jnp.bfloat16).astype(jnp.float32)
    w1 = 0.3 * jax.random.normal(ks[1], (hidden, Cin, 1, 1), jnp.float32)
    wdw = 0.3 * jax.random.normal(ks[2], (hidden, 1, k, k), jnp.float32)
    w3 = 0.3 * jax.random.normal(ks[3], (oup, hidden, 1, 1), jnp.float32)
    bn1 = bn_params(ks[4], hidden)
    bn2 = bn_params(ks[5], hidden)
    bn3 = bn_params(ks[6], oup)

    out = inverted_residual(x, w1, bn1, wdw, bn2, w3, bn3,
                            kernel_size=k, stride=stride, use_hs=use_hs, batch_block=NB)
    out = jax.block_until_ready(out)

    ref = ref_forward(x, w1, bn1, wdw, bn2, w3, bn3, k=k, stride=stride, use_hs=use_hs)
    assert out.shape == ref.shape, (name, out.shape, ref.shape)
    err = float(jnp.max(jnp.abs(out - ref)))
    # bf16 weights + bf16 matmul inputs vs. an all-f32 reference -> ~1% relative noise.
    assert jnp.allclose(out, ref, atol=1e-1, rtol=1e-1), (name, err)

  key = jax.random.PRNGKey(0)
  k_a, k_b = jax.random.split(key)
  # InvertedResidual(inp=8, hidden_dim=32, oup=8, k=3, stride=1, plug_in=0, use_hs=True)
  # -> expand branch with identity residual; grid=(2,) so both v7x TCs get work.
  run_case("s1_identity_hswish", k_a, N=2, Cin=8, hidden=32, oup=8,
           k=3, stride=1, use_hs=True, H=16, W=16, NB=1)
  # InvertedResidual(inp=8, hidden_dim=32, oup=16, k=3, stride=2, plug_in=0, use_hs=False)
  # -> expand branch, stride 2, ReLU; NB=1 keeps the parallel grid length at 2.
  run_case("s2_relu", k_b, N=2, Cin=8, hidden=32, oup=16,
           k=3, stride=2, use_hs=False, H=16, W=16, NB=1)
  print("KERNEL_OK")
</pallas_src>

<mosaic_0001>
module attributes {stable_mosaic.version = 11 : i64} {
  func.func @_inverted_residual_kernel(%arg0: i32, %arg1: memref<1x256x8xbf16, #tpu.memory_space<vmem>>, %arg2: memref<8x32xbf16, #tpu.memory_space<vmem>>, %arg3: memref<1x32xf32, #tpu.memory_space<vmem>>, %arg4: memref<9x32xf32, #tpu.memory_space<vmem>>, %arg5: memref<1x32xf32, #tpu.memory_space<vmem>>, %arg6: memref<32x8xbf16, #tpu.memory_space<vmem>>, %arg7: memref<1x8xf32, #tpu.memory_space<vmem>>, %arg8: memref<256x3xf32, #tpu.memory_space<vmem>>, %arg9: memref<1x256x8xf32, #tpu.memory_space<vmem>>, %arg10: memref<304x32xf32, #tpu.memory_space<vmem>>) attributes {dimension_semantics = [#tpu.dimension_semantics<parallel>], iteration_bounds = array<i64: 2>, scalar_prefetch = 0 : i64, scratch_operands = 1 : i64, tpu.core_type = #tpu.core_type<tc>, window_params = [{transform_indices = @transform_0, window_bounds = array<i64: 1, 256, 8>}, {pipeline_mode = #tpu.pipeline_mode<synchronous>, transform_indices = @transform_1, window_bounds = array<i64: 8, 32>}, {pipeline_mode = #tpu.pipeline_mode<synchronous>, transform_indices = @transform_2, window_bounds = array<i64: 1, 32>}, {pipeline_mode = #tpu.pipeline_mode<synchronous>, transform_indices = @transform_3, window_bounds = array<i64: 9, 32>}, {pipeline_mode = #tpu.pipeline_mode<synchronous>, transform_indices = @transform_4, window_bounds = array<i64: 1, 32>}, {pipeline_mode = #tpu.pipeline_mode<synchronous>, transform_indices = @transform_5, window_bounds = array<i64: 32, 8>}, {pipeline_mode = #tpu.pipeline_mode<synchronous>, transform_indices = @transform_6, window_bounds = array<i64: 1, 8>}, {pipeline_mode = #tpu.pipeline_mode<synchronous>, transform_indices = @transform_7, window_bounds = array<i64: 256, 3>}, {transform_indices = @transform_8, window_bounds = array<i64: 1, 256, 8>}]} {
    %cst = arith.constant 0.000000e+00 : f32
    %0 = vector.broadcast %cst : f32 to vector<24x32xf32>
    %c0 = arith.constant 0 : index
    %c0_0 = arith.constant 0 : index
    %1 = vector.load %arg10[%c0, %c0_0] : memref<304x32xf32, #tpu.memory_space<vmem>>, vector<24x32xf32>
    tpu.vector_store %arg10[%c0, %c0_0], %0 {strides = array<i32>} : memref<304x32xf32, #tpu.memory_space<vmem>>, vector<24x32xf32>,
    %cst_1 = arith.constant 0.000000e+00 : f32
    %2 = vector.broadcast %cst_1 : f32 to vector<24x32xf32>
    %c280 = arith.constant 280 : index
    %c0_2 = arith.constant 0 : index
    %3 = vector.load %arg10[%c280, %c0_2] : memref<304x32xf32, #tpu.memory_space<vmem>>, vector<24x32xf32>
    tpu.vector_store %arg10[%c280, %c0_2], %2 {strides = array<i32>} : memref<304x32xf32, #tpu.memory_space<vmem>>, vector<24x32xf32>,
    %c0_3 = arith.constant 0 : index
    %c0_4 = arith.constant 0 : index
    %c0_5 = arith.constant 0 : index
    %4 = vector.load %arg1[%c0_3, %c0_4, %c0_5] : memref<1x256x8xbf16, #tpu.memory_space<vmem>>, vector<1x256x8xbf16>
    %5 = vector.shape_cast %4 : vector<1x256x8xbf16> to vector<256x8xbf16>
    %c0_6 = arith.constant 0 : index
    %c0_7 = arith.constant 0 : index
    %6 = vector.load %arg2[%c0_6, %c0_7] : memref<8x32xbf16, #tpu.memory_space<vmem>>, vector<8x32xbf16>
    %cst_8 = arith.constant dense<0.000000e+00> : vector<256x32xf32>
    %7 = tpu.matmul %5, %6, %cst_8 {dimension_numbers = #tpu.dot_dimension_numbers<[1], [0], [0], [1], [0, 0, 1, 1], [], []>} : vector<256x8xbf16>, vector<8x32xbf16>, vector<256x32xf32> -> vector<256x32xf32>
    %c0_9 = arith.constant 0 : index
    %c0_10 = arith.constant 0 : index
    %8 = vector.load %arg3[%c0_9, %c0_10] : memref<1x32xf32, #tpu.memory_space<vmem>>, vector<1x32xf32>
    %9 = vector.broadcast %8 : vector<1x32xf32> to vector<256x32xf32>
    %10 = arith.addf %7, %9 : vector<256x32xf32>
    %cst_11 = arith.constant 3.000000e+00 : f32
    %11 = vector.broadcast %cst_11 : f32 to vector<256x32xf32>
    %12 = arith.addf %10, %11 : vector<256x32xf32>
    %cst_12 = arith.constant 0.000000e+00 : f32
    %cst_13 = arith.constant 6.000000e+00 : f32
    %13 = vector.broadcast %cst_12 : f32 to vector<256x32xf32>
    %14 = arith.maximumf %13, %12 : vector<256x32xf32>
    %15 = vector.broadcast %cst_13 : f32 to vector<256x32xf32>
    %16 = arith.minimumf %15, %14 : vector<256x32xf32>
    %17 = arith.mulf %10, %16 : vector<256x32xf32>
    %c0_14 = arith.constant 0 : index
    %c0_15 = arith.constant 0 : index
    %18 = vector.load %arg4[%c0_14, %c0_15] : memref<9x32xf32, #tpu.memory_space<vmem>>, vector<9x32xf32>
    %c0_16 = arith.constant 0 : index
    %c0_17 = arith.constant 0 : index
    %19 = vector.load %arg5[%c0_16, %c0_17] : memref<1x32xf32, #tpu.memory_space<vmem>>, vector<1x32xf32>
    %c0_18 = arith.constant 0 : index
    %c0_19 = arith.constant 0 : index
    %20 = vector.load %arg7[%c0_18, %c0_19] : memref<1x8xf32, #tpu.memory_space<vmem>>, vector<1x8xf32>
    %c0_20 = arith.constant 0 : index
    %c0_21 = arith.constant 0 : index
    %21 = vector.load %arg6[%c0_20, %c0_21] : memref<32x8xbf16, #tpu.memory_space<vmem>>, vector<32x8xbf16>
    %c24 = arith.constant 24 : index
    %c0_22 = arith.constant 0 : index
    %22 = vector.load %arg10[%c24, %c0_22] : memref<304x32xf32, #tpu.memory_space<vmem>>, vector<256x32xf32>
    tpu.vector_store %arg10[%c24, %c0_22], %17 {strides = array<i32>} : memref<304x32xf32, #tpu.memory_space<vmem>>, vector<256x32xf32>,
    %cst_23 = arith.constant 0.000000e+00 : f32
    %23 = vector.broadcast %cst_23 : f32 to vector<256x32xf32>
    %cst_24 = arith.constant 0.000000e+00 : f32
    %24 = vector.broadcast %cst_24 : f32 to vector<256x32xf32>
    %c7 = arith.constant 7 : index
    %c0_25 = arith.constant 0 : index
    %25 = vector.load %arg10[%c7, %c0_25] : memref<304x32xf32, #tpu.memory_space<vmem>>, vector<256x32xf32>
    %26 = vector.extract_strided_slice %18 {offsets = [0, 0], sizes = [1, 32], strides = [1, 1]} : vector<9x32xf32> to vector<1x32xf32>
    %27 = vector.broadcast %26 : vector<1x32xf32> to vector<256x32xf32>
    %28 = arith.mulf %25, %27 : vector<256x32xf32>
    %29 = arith.addf %24, %28 : vector<256x32xf32>
    %c23 = arith.constant 23 : index
    %c0_26 = arith.constant 0 : index
    %30 = vector.load %arg10[%c23, %c0_26] : memref<304x32xf32, #tpu.memory_space<vmem>>, vector<256x32xf32>
    %31 = vector.extract_strided_slice %18 {offsets = [3, 0], sizes = [1, 32], strides = [1, 1]} : vector<9x32xf32> to vector<1x32xf32>
    %32 = vector.broadcast %31 : vector<1x32xf32> to vector<256x32xf32>
    %33 = arith.mulf %30, %32 : vector<256x32xf32>
    %34 = arith.addf %29, %33 : vector<256x32xf32>
    %c39 = arith.constant 39 : index
    %c0_27 = arith.constant 0 : index
    %35 = vector.load %arg10[%c39, %c0_27] : memref<304x32xf32, #tpu.memory_space<vmem>>, vector<256x32xf32>
    %36 = vector.extract_strided_slice %18 {offsets = [6, 0], sizes = [1, 32], strides = [1, 1]} : vector<9x32xf32> to vector<1x32xf32>
    %37 = vector.broadcast %36 : vector<1x32xf32> to vector<256x32xf32>
    %38 = arith.mulf %35, %37 : vector<256x32xf32>
    %39 = arith.addf %34, %38 : vector<256x32xf32>
    %c0_28 = arith.constant 0 : index
    %c0_29 = arith.constant 0 : index
    %40 = vector.load %arg8[%c0_28, %c0_29] : memref<256x3xf32, #tpu.memory_space<vmem>>, vector<256x1xf32>
    %41 = vector.broadcast %40 : vector<256x1xf32> to vector<256x32xf32>
    %42 = arith.mulf %39, %41 : vector<256x32xf32>
    %43 = arith.addf %23, %42 : vector<256x32xf32>
    %cst_30 = arith.constant 0.000000e+00 : f32
    %44 = vector.broadcast %cst_30 : f32 to vector<256x32xf32>
    %c8 = arith.constant 8 : index
    %c0_31 = arith.constant 0 : index
    %45 = vector.load %arg10[%c8, %c0_31] : memref<304x32xf32, #tpu.memory_space<vmem>>, vector<256x32xf32>
    %46 = vector.extract_strided_slice %18 {offsets = [1, 0], sizes = [1, 32], strides = [1, 1]} : vector<9x32xf32> to vector<1x32xf32>
    %47 = vector.broadcast %46 : vector<1x32xf32> to vector<256x32xf32>
    %48 = arith.mulf %45, %47 : vector<256x32xf32>
    %49 = arith.addf %44, %48 : vector<256x32xf32>
    %c24_32 = arith.constant 24 : index
    %c0_33 = arith.constant 0 : index
    %50 = vector.load %arg10[%c24_32, %c0_33] : memref<304x32xf32, #tpu.memory_space<vmem>>, vector<256x32xf32>
    %51 = vector.extract_strided_slice %18 {offsets = [4, 0], sizes = [1, 32], strides = [1, 1]} : vector<9x32xf32> to vector<1x32xf32>
    %52 = vector.broadcast %51 : vector<1x32xf32> to vector<256x32xf32>
    %53 = arith.mulf %50, %52 : vector<256x32xf32>
    %54 = arith.addf %49, %53 : vector<256x32xf32>
    %c40 = arith.constant 40 : index
    %c0_34 = arith.constant 0 : index
    %55 = vector.load %arg10[%c40, %c0_34] : memref<304x32xf32, #tpu.memory_space<vmem>>, vector<256x32xf32>
    %56 = vector.extract_strided_slice %18 {offsets = [7, 0], sizes = [1, 32], strides = [1, 1]} : vector<9x32xf32> to vector<1x32xf32>
    %57 = vector.broadcast %56 : vector<1x32xf32> to vector<256x32xf32>
    %58 = arith.mulf %55, %57 : vector<256x32xf32>
    %59 = arith.addf %54, %58 : vector<256x32xf32>
    %60 = arith.addf %43, %59 : vector<256x32xf32>
    %cst_35 = arith.constant 0.000000e+00 : f32
    %61 = vector.broadcast %cst_35 : f32 to vector<256x32xf32>
    %c9 = arith.constant 9 : index
    %c0_36 = arith.constant 0 : index
    %62 = vector.load %arg10[%c9, %c0_36] : memref<304x32xf32, #tpu.memory_space<vmem>>, vector<256x32xf32>
    %63 = vector.extract_strided_slice %18 {offsets = [2, 0], sizes = [1, 32], strides = [1, 1]} : vector<9x32xf32> to vector<1x32xf32>
    %64 = vector.broadcast %63 : vector<1x32xf32> to vector<256x32xf32>
    %65 = arith.mulf %62, %64 : vector<256x32xf32>
    %66 = arith.addf %61, %65 : vector<256x32xf32>
    %c25 = arith.constant 25 : index
    %c0_37 = arith.constant 0 : index
    %67 = vector.load %arg10[%c25, %c0_37] : memref<304x32xf32, #tpu.memory_space<vmem>>, vector<256x32xf32>
    %68 = vector.extract_strided_slice %18 {offsets = [5, 0], sizes = [1, 32], strides = [1, 1]} : vector<9x32xf32> to vector<1x32xf32>
    %69 = vector.broadcast %68 : vector<1x32xf32> to vector<256x32xf32>
    %70 = arith.mulf %67, %69 : vector<256x32xf32>
    %71 = arith.addf %66, %70 : vector<256x32xf32>
    %c41 = arith.constant 41 : index
    %c0_38 = arith.constant 0 : index
    %72 = vector.load %arg10[%c41, %c0_38] : memref<304x32xf32, #tpu.memory_space<vmem>>, vector<256x32xf32>
    %73 = vector.extract_strided_slice %18 {offsets = [8, 0], sizes = [1, 32], strides = [1, 1]} : vector<9x32xf32> to vector<1x32xf32>
    %74 = vector.broadcast %73 : vector<1x32xf32> to vector<256x32xf32>
    %75 = arith.mulf %72, %74 : vector<256x32xf32>
    %76 = arith.addf %71, %75 : vector<256x32xf32>
    %c0_39 = arith.constant 0 : index
    %c2 = arith.constant 2 : index
    %77 = vector.load %arg8[%c0_39, %c2] : memref<256x3xf32, #tpu.memory_space<vmem>>, vector<256x1xf32>
    %78 = vector.broadcast %77 : vector<256x1xf32> to vector<256x32xf32>
    %79 = arith.mulf %76, %78 : vector<256x32xf32>
    %80 = arith.addf %60, %79 : vector<256x32xf32>
    %81 = vector.broadcast %19 : vector<1x32xf32> to vector<256x32xf32>
    %82 = arith.addf %80, %81 : vector<256x32xf32>
    %cst_40 = arith.constant 3.000000e+00 : f32
    %83 = vector.broadcast %cst_40 : f32 to vector<256x32xf32>
    %84 = arith.addf %82, %83 : vector<256x32xf32>
    %cst_41 = arith.constant 0.000000e+00 : f32
    %cst_42 = arith.constant 6.000000e+00 : f32
    %85 = vector.broadcast %cst_41 : f32 to vector<256x32xf32>
    %86 = arith.maximumf %85, %84 : vector<256x32xf32>
    %87 = vector.broadcast %cst_42 : f32 to vector<256x32xf32>
    %88 = arith.minimumf %87, %86 : vector<256x32xf32>
    %89 = arith.mulf %82, %88 : vector<256x32xf32>
    %90 = arith.truncf %89 : vector<256x32xf32> to vector<256x32xbf16>
    %cst_43 = arith.constant dense<0.000000e+00> : vector<256x8xf32>
    %91 = tpu.matmul %90, %21, %cst_43 {dimension_numbers = #tpu.dot_dimension_numbers<[1], [0], [0], [1], [0, 0, 1, 1], [], []>} : vector<256x32xbf16>, vector<32x8xbf16>, vector<256x8xf32> -> vector<256x8xf32>
    %92 = vector.broadcast %20 : vector<1x8xf32> to vector<256x8xf32>
    %93 = arith.addf %91, %92 : vector<256x8xf32>
    %94 = arith.extf %5 : vector<256x8xbf16> to vector<256x8xf32>
    %95 = arith.addf %93, %94 : vector<256x8xf32>
    %c0_44 = arith.constant 0 : index
    %c0_45 = arith.constant 0 : index
    %c0_46 = arith.constant 0 : index
    %96 = vector.load %arg9[%c0_44, %c0_45, %c0_46] : memref<1x256x8xf32, #tpu.memory_space<vmem>>, vector<1x256x8xf32>
    %97 = vector.shape_cast %96 : vector<1x256x8xf32> to vector<256x8xf32>
    %98 = vector.shape_cast %95 : vector<256x8xf32> to vector<1x256x8xf32>
    tpu.vector_store %arg9[%c0_44, %c0_45, %c0_46], %98 {strides = array<i32>} : memref<1x256x8xf32, #tpu.memory_space<vmem>>, vector<1x256x8xf32>,
    return
  }
  func.func @transform_0(%arg0: i32) -> (i32, i32, i32) {
    %c0_i32 = arith.constant 0 : i32
    %c0_i32_0 = arith.constant 0 : i32
    %c0_i32_1 = arith.constant 0 : i32
    return %arg0, %c0_i32, %c0_i32_0 : i32, i32, i32
  }
  func.func @transform_1(%arg0: i32) -> (i32, i32) {
    %c0_i32 = arith.constant 0 : i32
    %c0_i32_0 = arith.constant 0 : i32
    %c0_i32_1 = arith.constant 0 : i32
    return %c0_i32, %c0_i32_0 : i32, i32
  }
  func.func @transform_2(%arg0: i32) -> (i32, i32) {
    %c0_i32 = arith.constant 0 : i32
    %c0_i32_0 = arith.constant 0 : i32
    %c0_i32_1 = arith.constant 0 : i32
    return %c0_i32, %c0_i32_0 : i32, i32
  }
  func.func @transform_3(%arg0: i32) -> (i32, i32) {
    %c0_i32 = arith.constant 0 : i32
    %c0_i32_0 = arith.constant 0 : i32
    %c0_i32_1 = arith.constant 0 : i32
    return %c0_i32, %c0_i32_0 : i32, i32
  }
  func.func @transform_4(%arg0: i32) -> (i32, i32) {
    %c0_i32 = arith.constant 0 : i32
    %c0_i32_0 = arith.constant 0 : i32
    %c0_i32_1 = arith.constant 0 : i32
    return %c0_i32, %c0_i32_0 : i32, i32
  }
  func.func @transform_5(%arg0: i32) -> (i32, i32) {
    %c0_i32 = arith.constant 0 : i32
    %c0_i32_0 = arith.constant 0 : i32
    %c0_i32_1 = arith.constant 0 : i32
    return %c0_i32, %c0_i32_0 : i32, i32
  }
  func.func @transform_6(%arg0: i32) -> (i32, i32) {
    %c0_i32 = arith.constant 0 : i32
    %c0_i32_0 = arith.constant 0 : i32
    %c0_i32_1 = arith.constant 0 : i32
    return %c0_i32, %c0_i32_0 : i32, i32
  }
  func.func @transform_7(%arg0: i32) -> (i32, i32) {
    %c0_i32 = arith.constant 0 : i32
    %c0_i32_0 = arith.constant 0 : i32
    %c0_i32_1 = arith.constant 0 : i32
    return %c0_i32, %c0_i32_0 : i32, i32
  }
  func.func @transform_8(%arg0: i32) -> (i32, i32, i32) {
    %c0_i32 = arith.constant 0 : i32
    %c0_i32_0 = arith.constant 0 : i32
    %c0_i32_1 = arith.constant 0 : i32
    return %arg0, %c0_i32, %c0_i32_0 : i32, i32, i32
  }
}

</mosaic_0001>

<bundles_post_ra>
// kernel: tpu_custom_call.1
= control target key start
LH: loop header
LB: loop body
LE: loop exit
PB: predicated region body
PF: predicated region fallthrough
CT: control target
= control target key end

     0   :  { %s2893_s27 = smov 0   ;;  %s4418_s0 = inlined_call_operand.vmem [shape: bf16[2,256,8], index: 0, kind: input, shape index: {}]   ;;  %s4419_s1 = inlined_call_operand.vmem [shape: bf16[8,32], index: 1, kind: input, shape index: {}]   ;;  %s4420_s2 = inlined_call_operand.vmem [shape: f32[1,32], index: 2, kind: input, shape index: {}]   ;;  %s4421_s3 = inlined_call_operand.vmem [shape: f32[9,32], index: 3, kind: input, shape index: {}]   ;;  %s4422_s4 = inlined_call_operand.vmem [shape: f32[1,32], index: 4, kind: input, shape index: {}]   ;;  %s4423_s5 = inlined_call_operand.vmem [shape: bf16[32,8], index: 5, kind: input, shape index: {}]   ;;  %s4424_s6 = inlined_call_operand.vmem [shape: f32[1,8], index: 6, kind: input, shape index: {}]   ;;  %s4425_s7 = inlined_call_operand.vmem [shape: f32[256,3], index: 7, kind: input, shape index: {}]   ;;  %s4426_s8 = inlined_call_operand.vmem [shape: f32[2,256,8], index: 8, kind: output, shape index: {}]  }
   0x1 LB: > { %s2576_s28 = sadd.s32 4294967295, %s2843_s27   ;;  %p2580_p0 = scmp.ge.s32.totalorder %s2843_s27, 1  ;;  %s2843_s27 = sphi %s2893_s27, %s18_s27  }
   0x2   : > { %p262_p1 = scmp.lt.s32.totalorder %s2843_s27, 3 }
   0x4   : > { %p263_p2 = pnand %p2580_p0, %p262_p1 }
   0x6   : > { %266 = sbr.rel (%p263_p2) target bundleno = 713 (0x2c9), region = 52 }
   0xd   : > { %v346_v0 = vld [vmem:[%s4419_s1] sm:$0xf]  ;;  %vm483_vm0 = vcmask 1043456   ;;  %p296_p3 = scmp.lt.s32.totalorder %s2576_s28, 1  ;;  %v2845_v2 = vmov 0   ;;  %v1058_v3 = vld [vmem:[%s4425_s7 + $0x10] sm:$0xff] }
   0xe   : > { %2748 = vmatprep.subr.msk.bf16.mxu0 %vm483_vm0, %v346_v0  ;;  %v485_v1 = vsel %vm483_vm0, %v346_v0, 0  ;;  %2761 = vset.pattern.permute.xlu1 %v2845_v2  ;;  %v1056_v4 = vld [vmem:[%s4425_s7] sm:$0xff]  ;;  %v2916_v5 = vld [vmem:[%s4425_s7 + $0x18] sm:$0xff]  ;;  %vm434_vm1 = vcmask 64512   ;;  %v1057_v9 = vld [vmem:[%s4425_s7 + $0x8] sm:$0xff]  ;;  %v2846_v11 = vmov 2  }
   0xf   : > { %2679 = vmatpush3.bf16.msra.mxu0 %v485_v1  ;;  %s4583_s28 = smov (!%p296_p3, %s2576_s28), 1  ;;  %1100 = vperm.xlu1 %2761, %v1058_v3   ;;  %v1061_v10 = vld [vmem:[%s4425_s7 + $0x28] sm:$0xff]  ;;  %v1060_v15 = vld [vmem:[%s4425_s7 + $0x20] sm:$0xff]  ;;  %v1062_v19 = vld [vmem:[%s4425_s7 + $0x30] sm:$0xff]  ;;  %vm307_vm2 = vcmask 261120   ;;  %v2847_v49 = vmov 0.0  }
  0x10   : > { %2760 = vset.pattern.permute.xlu0 %v2845_v2  ;;  %s2641_s15 = sshll.u32 %s4583_s28, 7  ;;  %v1065_v14 = vld [vmem:[%s4425_s7 + $0x48] sm:$0xff]  ;;  %v1063_v21 = vld [vmem:[%s4425_s7 + $0x38] sm:$0xff]  ;;  %v1064_v29 = vld [vmem:[%s4425_s7 + $0x40] sm:$0xff]  ;;  %308 = vst.msk [vmem:[#allocation2] sm:$0xff] %vm307_vm2, %v2847_v49  ;;  %s2642_s19 = sshll.u32 %s4583_s28, 8 }
  0x11   : > { %1090 = vperm.xlu0 %2760, %v1056_v4   ;;  %s2923_s18 = scalar_lea.vmem %s4418_s0, %s2641_s15  ;;  %v2950_v16 = vld [vmem:[%s4425_s7 + $0x68] sm:$0xff]  ;;  %v1066_v31 = vld [vmem:[%s4425_s7 + $0x50] sm:$0xff]  ;;  %v1067_v33 = vld [vmem:[%s4425_s7 + $0x58] sm:$0xff]  ;;  %309 = vst.msk [vmem:[#allocation2 + $0x8] sm:$0xff] %vm307_vm2, %v2847_v49  ;;  %s4304_s22 = scalar_lea.vmem %s4426_s8, %s2642_s19 }
  0x12   : > { %v314_v6 = vld [vmem:[%s2923_s18] sm:$0xff]   ;;  %v316_v7 = vld [vmem:[%s2923_s18 + $0x8] sm:$0xff]   ;;  %v318_v8 = vld [vmem:[%s2923_s18 + $0x10] sm:$0xff]   ;;  %310 = vst.msk [vmem:[#allocation2 + $0x10] sm:$0xff] %vm307_vm2, %v2847_v49 }
  0x13   : > { %1105 = vperm.xlu1 %2761, %v2916_v5   ;;  %2680 = vmatprep.mubr.msk.bf16.mxu0 %vm434_vm1, %v314_v6  ;;  %v320_v12 = vld [vmem:[%s2923_s18 + $0x18] sm:$0xff]   ;;  %v322_v13 = vld [vmem:[%s2923_s18 + $0x20] sm:$0xff]   ;;  %v324_v17 = vld [vmem:[%s2923_s18 + $0x28] sm:$0xff]   ;;  %311 = vst.msk [vmem:[#allocation2 + $0x118] sm:$0xff] %vm307_vm2, %v2847_v49 }
  0x14   : > { %2681 = vmatmul.mubr.msk.bf16.vlgmr.msra.gmra.mrb[0].mxu0 %vm434_vm1, %v316_v7  ;;  %v326_v18 = vld [vmem:[%s2923_s18 + $0x30] sm:$0xff]   ;;  %v2964_v20 = vld [vmem:[%s4425_s7 + $0x88] sm:$0xff]  ;;  %v328_v23 = vld [vmem:[%s2923_s18 + $0x38] sm:$0xff]   ;;  %312 = vst.msk [vmem:[#allocation2 + $0x120] sm:$0xff] %vm307_vm2, %v2847_v49 }
  0x15   : > { %1095 = vperm.xlu0 %2760, %v1057_v9   ;;  %2684 = vmatprep.mubr.msk.bf16.mxu0 %vm434_vm1, %v318_v8  ;;  %v2973_v22 = vld [vmem:[%s4425_s7 + $0xa8] sm:$0xff]  ;;  %v330_v24 = vld [vmem:[%s2923_s18 + $0x40] sm:$0xff]   ;;  %v334_v28 = vld [vmem:[%s2923_s18 + $0x50] sm:$0xff]   ;;  %313 = vst.msk [vmem:[#allocation2 + $0x128] sm:$0xff] %vm307_vm2, %v2847_v49 }
  0x16   : > { %v2983_v25 = vld [vmem:[%s4425_s7 + $0xc8] sm:$0xff]  ;;  %v336_v30 = vld [vmem:[%s2923_s18 + $0x58] sm:$0xff]   ;;  %v338_v32 = vld [vmem:[%s2923_s18 + $0x60] sm:$0xff]  }
  0x17   : > { %2762 = vset.pattern.permute.xlu1 %v2846_v11  ;;  %v2990_v26 = vld [vmem:[%s4425_s7 + $0xe8] sm:$0xff]  ;;  %v342_v35 = vld [vmem:[%s2923_s18 + $0x70] sm:$0xff]   ;;  %v344_v36 = vld [vmem:[%s2923_s18 + $0x78] sm:$0xff]  }
  0x18   : > { %1829 = vperm.xlu1 %2762, %v1057_v9   ;;  %v332_v27 = vld [vmem:[%s2923_s18 + $0x48] sm:$0xff]   ;;  %v1068_v37 = vld [vmem:[%s4425_s7 + $0x60] sm:$0xff]  ;;  %v1070_v38 = vld [vmem:[%s4425_s7 + $0x70] sm:$0xff] }
  0x19   : > { %1115 = vperm.xlu0 %2760, %v1061_v10   ;;  %v340_v34 = vld [vmem:[%s2923_s18 + $0x68] sm:$0xff]   ;;  %v1071_v39 = vld [vmem:[%s4425_s7 + $0x78] sm:$0xff]  ;;  %v1072_v40 = vld [vmem:[%s4425_s7 + $0x80] sm:$0xff] }
  0x1a   : > { %v1075_v41 = vld [vmem:[%s4425_s7 + $0x98] sm:$0xff]  ;;  %v1076_v42 = vld [vmem:[%s4425_s7 + $0xa0] sm:$0xff]  ;;  %v1074_v45 = vld [vmem:[%s4425_s7 + $0x90] sm:$0xff] }
  0x1b   : > { %v1079_v43 = vld [vmem:[%s4425_s7 + $0xb8] sm:$0xff]  ;;  %v1080_v44 = vld [vmem:[%s4425_s7 + $0xc0] sm:$0xff]  ;;  %v1078_v50 = vld [vmem:[%s4425_s7 + $0xb0] sm:$0xff] }
  0x1c   : > { %1833 = vperm.xlu1 %2762, %v1058_v3   ;;  %2685 = vmatmul.mubr.msk.bf16.gmra.mrb[4].mxu0 %vm434_vm1, %v320_v12  ;;  %v1083_v46 = vld [vmem:[%s4425_s7 + $0xd8] sm:$0xff]  ;;  %v1084_v47 = vld [vmem:[%s4425_s7 + $0xe0] sm:$0xff]  ;;  %v1082_v51 = vld [vmem:[%s4425_s7 + $0xd0] sm:$0xff] }
  0x1d   : > { %1135 = vperm.xlu0 %2760, %v1065_v14   ;;  %2688 = vmatprep.mubr.msk.bf16.mxu0 %vm434_vm1, %v322_v13  ;;  %v1087_v48 = vld [vmem:[%s4425_s7 + $0xf8] sm:$0xff]  ;;  %v2794_v52 = vld [vmem:[%s4423_s5] sm:$0xff]   ;;  %v2795_v54 = vld [vmem:[%s4423_s5 + $0x8] sm:$0xff]  }
  0x1e   : > { %2712 = vmatprep.subr.bf16.mxu1 %v2794_v52  ;;  %v1086_v57 = vld [vmem:[%s4425_s7 + $0xf0] sm:$0xff]  ;;  %v3131_v9 = vld [vmem:[%s4420_s2] ss:$0 sm:$0xff] }
  0x1f   : > { %2713 = vmatpush3.bf16.msra.mxu1 %v2794_v52  ;;  %v817_v49 = vld [vmem:[#allocation2 + $0xf] sm:$0xff] }
  0x20   : > { %2763 = vset.pattern.permute.xlu1 %v2845_v2  ;;  %2714 = vmatprep.subr.bf16.mxu1 %v2795_v54 }
  0x21   : > { %1110 = vperm.xlu1 %2763, %v1060_v15   ;;  %1155 = vperm.xlu0 %2760, %v2950_v16  }
  0x23   : > { %2715 = vmatpush3.bf16.msra.mxu1 %v2795_v54 }
  0x24   : > { %2689 = vmatmul.mubr.msk.bf16.gmra.mrb[8].mxu0 %vm434_vm1, %v324_v17  ;;  %v3141_v17 = vld [vmem:[%s4421_s3] sm:$0xff] }
  0x25   : > { %1120 = vperm.xlu1 %2763, %v1062_v19   ;;  %1175 = vperm.xlu0 %2760, %v2964_v20  }
  0x26   : > { %2692 = vmatprep.mubr.msk.bf16.mxu0 %vm434_vm1, %v326_v18 }
  0x29   : > { %1125 = vperm.xlu1 %2763, %v1063_v21   ;;  %1195 = vperm.xlu0 %2760, %v2973_v22  }
  0x2c   : > { %2693 = vmatmul.mubr.msk.bf16.gmra.mrb[12].mxu0 %vm434_vm1, %v328_v23 }
  0x2d   : > { %2764 = vset.pattern.permute.xlu1 %v2846_v11  ;;  %1215 = vperm.xlu0 %2760, %v2983_v25  }
  0x2e   : > { %1845 = vperm.xlu1 %2764, %v1061_v10   ;;  %2696 = vmatprep.mubr.msk.bf16.mxu0 %vm434_vm1, %v330_v24 }
  0x31   : > { %1235 = vperm.xlu0 %2760, %v2990_v26  }
  0x32   : > { %1849 = vperm.xlu1 %2764, %v1062_v19  }
  0x34   : > { %2697 = vmatmul.mubr.msk.bf16.gmra.mrb[16].mxu0 %vm434_vm1, %v332_v27 }
  0x35   : > { %2776 = vset.pattern.permute.xlu0 %v2846_v11  ;;  %2700 = vmatprep.mubr.msk.bf16.mxu0 %vm434_vm1, %v334_v28 }
  0x36   : > { %2765 = vset.pattern.permute.xlu1 %v2845_v2  ;;  %1825 = vperm.xlu0 %2776, %v1056_v4  }
  0x37   : > { %1130 = vperm.xlu1 %2765, %v1064_v29  }
  0x3a   : > { %1837 = vperm.xlu0 %2776, %v2916_v5   ;;  %v848_v5 = vlaneseq }
  0x3b   : > { %1140 = vperm.xlu1 %2765, %v1066_v31  }
  0x3c   : > { %2701 = vmatmul.mubr.msk.bf16.gmra.mrb[20].mxu0 %vm434_vm1, %v336_v30  ;;  %v3126_v8 = vshrl.u32 %v848_v5, 7  ;;  %v816_v30 = vld [vmem:[#allocation2 + $0x7] sm:$0xff] }
  0x3d   : > { %2704 = vmatprep.mubr.msk.bf16.mxu0 %vm434_vm1, %v338_v32 }
  0x3e   : > { %1841 = vperm.xlu0 %2776, %v1060_v15   ;;  %v850_v13 = vsub.s32 0, %v3126_v8  ;;  %v920_v24 = vsub.s32 3, %v3126_v8 }
  0x3f   : > { %1145 = vperm.xlu1 %2765, %v1067_v33  }
  0x40   : > { %v3149_v27 = vrot.slane %v3141_v17, %v850_v13  ;;  %v1312_v13 = vld [vmem:[#allocation2 + $0x8] sm:$0xff] }
  0x42   : > { %1853 = vperm.xlu0 %2776, %v1063_v21  }
  0x43   : > { %2766 = vset.pattern.permute.xlu1 %v2846_v11 }
  0x44   : > { %1861 = vperm.xlu1 %2766, %v1065_v14   ;;  %2705 = vmatmul.mubr.msk.bf16.gmra.mrb[24].mxu0 %vm434_vm1, %v340_v34 }
  0x45   : > { %2708 = vmatprep.mubr.msk.bf16.mxu0 %vm434_vm1, %v342_v35 }
  0x46   : > { %1857 = vperm.xlu0 %2776, %v1064_v29  }
  0x48   : > { %1865 = vperm.xlu1 %2766, %v1066_v31  }
  0x4a   : > { %1869 = vperm.xlu0 %2776, %v1067_v33   ;;  %v1346_v33 = vsub.s32 1, %v3126_v8 }
  0x4c   : > { %2767 = vset.pattern.permute.xlu1 %v2845_v2  ;;  %2709 = vmatmul.mubr.msk.bf16.gmra.mrb[28].mxu0 %vm434_vm1, %v344_v36  ;;  %v3168_v5 = vrot.slane %v3141_v17, %v1346_v33  ;;  %v1688_v33 = vsub.s32 5, %v3126_v8 }
  0x4d   : > { %1150 = vperm.xlu1 %2767, %v1068_v37  }
  0x4e   : > { %1873 = vperm.xlu0 %2776, %v1068_v37   ;;  %4459 = vst [vmem:[#allocation14_spill] sm:$0xff] %v3168_v5 }
  0x51   : > { %1160 = vperm.xlu1 %2767, %v1070_v38  }
  0x52   : > { %1885 = vperm.xlu0 %2776, %v1071_v39  }
  0x55   : > { %1165 = vperm.xlu1 %2767, %v1071_v39  }
  0x56   : > { %1889 = vperm.xlu0 %2776, %v1072_v40  }
  0x59   : > { %2768 = vset.pattern.permute.xlu1 %v2846_v11 }
  0x5a   : > { %1877 = vperm.xlu1 %2768, %v2950_v16   ;;  %1901 = vperm.xlu0 %2776, %v1075_v41  }
  0x5e   : > { %1881 = vperm.xlu1 %2768, %v1070_v38   ;;  %1905 = vperm.xlu0 %2776, %v1076_v42   ;;  %v3155_v38 = vrot.slane %v3141_v17, %v920_v24  ;;  %v1486_v24 = vsub.s32 7, %v3126_v8 }
  0x62   : > { %2769 = vset.pattern.permute.xlu1 %v2845_v2  ;;  %1917 = vperm.xlu0 %2776, %v1079_v43  }
  0x63   : > { %1170 = vperm.xlu1 %2769, %v1072_v40  }
  0x66   : > { %1921 = vperm.xlu0 %2776, %v1080_v44  }
  0x67   : > { %1180 = vperm.xlu1 %2769, %v1074_v45  }
  0x6a   : > { %1933 = vperm.xlu0 %2776, %v1083_v46  }
  0x6b   : > { %1185 = vperm.xlu1 %2769, %v1075_v41  }
  0x6e   : > { %1937 = vperm.xlu0 %2776, %v1084_v47  }
  0x6f   : > { %2770 = vset.pattern.permute.xlu1 %v2846_v11 }
  0x70   : > { %1893 = vperm.xlu1 %2770, %v2964_v20  }
  0x72   : > { %1949 = vperm.xlu0 %2776, %v1087_v48  }
  0x74   : > { %1897 = vperm.xlu1 %2770, %v1074_v45  }
  0x78   : > { %2771 = vset.pattern.permute.xlu1 %v2845_v2 }
  0x79   : > { %1190 = vperm.xlu1 %2771, %v1076_v42  }
  0x7d   : > { %1200 = vperm.xlu1 %2771, %v1078_v50  }
  0x81   : > { %1205 = vperm.xlu1 %2771, %v1079_v43  }
  0x85   : > { %2772 = vset.pattern.permute.xlu1 %v2846_v11 }
  0x86   : > { %1909 = vperm.xlu1 %2772, %v2973_v22  }
  0x8a   : > { %1913 = vperm.xlu1 %2772, %v1078_v50   ;;  %v990_v50 = vsub.s32 6, %v3126_v8 }
  0x8e   : > { %2773 = vset.pattern.permute.xlu1 %v2845_v2  ;;  %v3083_v53 = vpop.permute.xlu1 %1100 }
  0x8f   : > { %1210 = vperm.xlu1 %2773, %v1080_v44   ;;  %v3161_v44 = vmul.f32 %v3149_v27, %v816_v30 }
  0x90   : > { %v3122_v6 = vpop.permute.xlu0 %1090 }
  0x92   : > { %v3090_v55 = vpop.permute.xlu1 %1105 }
  0x93   : > { %1220 = vperm.xlu1 %2773, %v1082_v51  }
  0x94   : > { %v3135_v14 = vpop.permute.xlu0 %1095 }
  0x97   : > { %1225 = vperm.xlu1 %2773, %v1083_v46   ;;  %v3092_v56 = vpop.permute.xlu1 %1829 }
  0x98   : > { %v3152_v34 = vpop.permute.xlu0 %1115 }
  0x9b   : > { %2774 = vset.pattern.permute.xlu1 %v2846_v11  ;;  %v3098_v58 = vpop.permute.xlu1 %1833 }
  0x9c   : > { %1925 = vperm.xlu1 %2774, %v2983_v25  }
  0xa0   : > { %1929 = vperm.xlu1 %2774, %v1082_v51   ;;  %v3100_v59 = vpop.permute.xlu1 %1110 }
  0xa4   : > { %2775 = vset.pattern.permute.xlu1 %v2845_v2  ;;  %v3104_v60 = vpop.permute.xlu1 %1120 }
  0xa5   : > { %1230 = vperm.xlu1 %2775, %v1084_v47   ;;  %4448 = vst [vmem:[#allocation3_spill] sm:$0xff] %v3104_v60 }
  0xa8   : > { %v3106_v61 = vpop.permute.xlu1 %1125 }
  0xa9   : > { %1240 = vperm.xlu1 %2775, %v1086_v57   ;;  %4449 = vst [vmem:[#allocation4_spill] sm:$0xff] %v3106_v61 }
  0xad   : > { %1245 = vperm.xlu1 %2775, %v1087_v48   ;;  %v3108_v62 = vpop.permute.xlu1 %1845 }
  0xb1   : > { %2777 = vset.pattern.permute.xlu1 %v2846_v11  ;;  %v3110_v63 = vpop.permute.xlu1 %1849 }
  0xb2   : > { %1941 = vperm.xlu1 %2777, %v2990_v26   ;;  %4450 = vst [vmem:[#allocation5_spill] sm:$0xff] %v3110_v63 }
  0xb6   : > { %1945 = vperm.xlu1 %2777, %v1086_v57   ;;  %v3112_v0 = vpop.permute.xlu1 %1130 }
  0xb7   : > { %4451 = vst [vmem:[#allocation6_spill] sm:$0xff] %v3112_v0 }
  0xba   : > { %v3114_v1 = vpop.permute.xlu1 %1140 }
  0xbb   : > { %4452 = vst [vmem:[#allocation7_spill] sm:$0xff] %v3114_v1 }
  0xbe   : > { %v3116_v2 = vpop.permute.xlu1 %1145 }
  0xbf   : > { %4453 = vst [vmem:[#allocation8_spill] sm:$0xff] %v3116_v2 }
  0xc3   : > { %v3118_v3 = vpop.permute.xlu1 %1861 }
  0xc4   : > { %4454 = vst [vmem:[#allocation9_spill] sm:$0xff] %v3118_v3 }
  0xc7   : > { %v3120_v4 = vpop.permute.xlu1 %1865 }
  0xc8   : > { %4455 = vst [vmem:[#allocation10_spill] sm:$0xff] %v3120_v4 }
  0xcc   : > { %v3124_v7 = vpop.permute.xlu1 %1150 }
  0xcd   : > { %4456 = vst [vmem:[#allocation11_spill] sm:$0xff] %v3124_v7 }
  0xd0   : > { %v3143_v18 = vpop.permute.xlu1 %1160 }
  0xd1   : > { %4457 = vst [vmem:[#allocation12_spill] sm:$0xff] %v3143_v18 }
  0xd4   : > { %v3157_v39 = vpop.permute.xlu1 %1165 }
  0xd5   : > { %4458 = vst [vmem:[#allocation13_spill] sm:$0xff] %v3157_v39 }
  0xe7   : > { %v2682_v10 = vpop.f32.mrb[0].mxu0 }
  0xe8   : > { %v530_v11 = vadd.f32 %v2682_v10, %v3131_v9  ;;  %v521_v12 = vpop.f32.mrb[1].mxu0 }
  0xe9   : > { %v522_v15 = vadd.f32 %v3131_v9, %v521_v12  ;;  %v2683_v16 = vpop.f32.mrb[2].mxu0 }
  0xea   : > { %v650_v19 = vadd.f32 3.0, %v530_v11  ;;  %v533_v20 = vadd.f32 %v2683_v16, %v3131_v9  ;;  %v524_v21 = vpop.f32.mrb[3].mxu0  ;;  %v3173_v16 = vpop.permute.xlu1 %1877 }
  0xeb   : > { %v648_v22 = vadd.f32 3.0, %v522_v15  ;;  %v525_v23 = vadd.f32 %v3131_v9, %v524_v21  ;;  %4460 = vst [vmem:[#allocation15_spill] sm:$0xff] %v3173_v16  ;;  %v3177_v21 = vmul.f32 %v3149_v27, %v817_v49  ;;  %v3199_v49 = vrot.slane %v3141_v17, %v1486_v24 }
  0xec   : > { %v682_v25 = vmax.f32 %v650_v19, 0.0  ;;  %v651_v26 = vadd.f32 3.0, %v533_v20 }
  0xed   : > { %v680_v28 = vmax.f32 %v648_v22, 0.0  ;;  %v649_v29 = vadd.f32 3.0, %v525_v23  ;;  %v1313_v22 = vld [vmem:[#allocation2 + $0x10] sm:$0xff] }
  0xee   : > { %v714_v31 = vmin.f32 %v682_v25, 6.0  ;;  %v683_v32 = vmax.f32 %v651_v26, 0.0  ;;  %v3180_v25 = vpop.permute.xlu0 %1135 }
  0xef   : > { %v712_v35 = vmin.f32 %v680_v28, 6.0  ;;  %v681_v36 = vmax.f32 %v649_v29, 0.0  ;;  %v2686_v37 = vpop.f32.mrb[4].mxu0  ;;  %4461 = vst [vmem:[#allocation16_spill] sm:$0xff] %v3180_v25  ;;  %v3184_v28 = vrot.slane %v3141_v17, %v990_v50  ;;  %v1618_v29 = vsub.s32 2, %v3126_v8  ;;  %v1584_v50 = vld [vmem:[#allocation2 + $0x9] sm:$0xff] }
  0xf0   : > { %v746_v40 = vmul.f32 %v714_v31, %v530_v11  ;;  %v715_v41 = vmin.f32 %v683_v32, 6.0  ;;  %v546_v42 = vadd.f32 %v2686_v37, %v3131_v9  ;;  %v537_v43 = vpop.f32.mrb[5].mxu0  ;;  %v3188_v32 = vmul.f32 %v3168_v5, %v1312_v13  ;;  %v3207_v13 = vpop.permute.xlu1 %1881 }
  0xf1   : > { %v744_v45 = vmul.f32 %v712_v35, %v522_v15  ;;  %v713_v46 = vmin.f32 %v681_v36, 6.0  ;;  %v538_v47 = vadd.f32 %v3131_v9, %v537_v43  ;;  %v2687_v48 = vpop.f32.mrb[6].mxu0  ;;  %v1416_v15 = vsub.s32 4, %v3126_v8  ;;  %4462 = vst [vmem:[#allocation17_spill] sm:$0xff] %v3207_v13 }
  0xf2   : > { %786 = vst.msk [vmem:[#allocation2 + $0x28] sm:$0xff] %vm307_vm2, %v746_v40  ;;  %v747_v51 = vmul.f32 %v715_v41, %v533_v20  ;;  %v654_v52 = vadd.f32 3.0, %v546_v42  ;;  %v549_v54 = vadd.f32 %v2687_v48, %v3131_v9  ;;  %v540_v57 = vpop.f32.mrb[7].mxu0  ;;  %v3192_v40 = vmul.f32 %v3168_v5, %v1313_v22  ;;  %v3214_v24 = vpop.permute.xlu0 %1155 }
  0xf3   : > { %784 = vst.msk [vmem:[#allocation2 + $0x18] sm:$0xff] %vm307_vm2, %v744_v45  ;;  %v745_v10 = vmul.f32 %v713_v46, %v525_v23  ;;  %v652_v11 = vadd.f32 3.0, %v538_v47  ;;  %v541_v12 = vadd.f32 %v3131_v9, %v540_v57  ;;  %v3195_v41 = vrot.slane %v3141_v17, %v1416_v15  ;;  %4463 = vst [vmem:[#allocation18_spill] sm:$0xff] %v3214_v24 }
  0xf4   : > { %787 = vst.msk [vmem:[#allocation2 + $0x30] sm:$0xff] %vm307_vm2, %v747_v51  ;;  %v686_v19 = vmax.f32 %v654_v52, 0.0  ;;  %v655_v20 = vadd.f32 3.0, %v549_v54 }
  0xf5   : > { %785 = vst.msk [vmem:[#allocation2 + $0x20] sm:$0xff] %vm307_vm2, %v745_v10  ;;  %v684_v23 = vmax.f32 %v652_v11, 0.0  ;;  %v653_v26 = vadd.f32 3.0, %v541_v12  ;;  %v3205_v11 = vrot.slane %v3141_v17, %v1618_v29 }
  0xf6   : > { %v718_v30 = vmin.f32 %v686_v19, 6.0  ;;  %v687_v31 = vmax.f32 %v655_v20, 0.0  ;;  %v3246_v16 = vpop.permute.xlu0 %1175 }
  0xf7   : > { %v716_v35 = vmin.f32 %v684_v23, 6.0  ;;  %v685_v36 = vmax.f32 %v653_v26, 0.0  ;;  %v2690_v37 = vpop.f32.mrb[8].mxu0  ;;  %4465 = vst [vmem:[#allocation20_spill] sm:$0xff] %v3246_v16 }
  0xf8   : > { %v750_v43 = vmul.f32 %v718_v30, %v546_v42  ;;  %v719_v45 = vmin.f32 %v687_v31, 6.0  ;;  %v562_v46 = vadd.f32 %v2690_v37, %v3131_v9  ;;  %v553_v48 = vpop.f32.mrb[9].mxu0  ;;  %v3219_v31 = vmul.f32 %v3205_v11, %v1584_v50 }
  0xf9   : > { %v748_v51 = vmul.f32 %v716_v35, %v538_v47  ;;  %v717_v8 = vmin.f32 %v685_v36, 6.0  ;;  %v554_v52 = vadd.f32 %v3131_v9, %v553_v48  ;;  %v2691_v57 = vpop.f32.mrb[10].mxu0  ;;  %v3202_v10 = vld [vmem:[#allocation2 + $0x28] sm:$0xff]  ;;  %v3212_v47 = vrot.slane %v3141_v17, %v1688_v33 }
  0xfa   : > { %790 = vst.msk [vmem:[#allocation2 + $0x48] sm:$0xff] %vm307_vm2, %v750_v43  ;;  %v751_v42 = vmul.f32 %v719_v45, %v549_v54  ;;  %v658_v15 = vadd.f32 3.0, %v562_v46  ;;  %v565_v19 = vadd.f32 %v2691_v57, %v3131_v9  ;;  %v556_v20 = vpop.f32.mrb[11].mxu0  ;;  %v818_v22 = vld [vmem:[#allocation2 + $0x17] sm:$0xff]  ;;  %v3225_v33 = vmul.f32 %v3168_v5, %v3202_v10 }
  0xfb   : > { %788 = vst.msk [vmem:[#allocation2 + $0x38] sm:$0xff] %vm307_vm2, %v748_v51  ;;  %v749_v23 = vmul.f32 %v717_v8, %v541_v12  ;;  %v656_v26 = vadd.f32 3.0, %v554_v52  ;;  %v557_v29 = vadd.f32 %v3131_v9, %v556_v20  ;;  %v821_v30 = vld [vmem:[#allocation2 + $0x2f] sm:$0xff]  ;;  %v922_v17 = vmul.f32 %v3155_v38, %v818_v22 }
  0xfc   : > { %791 = vst.msk [vmem:[#allocation2 + $0x50] sm:$0xff] %vm307_vm2, %v751_v42  ;;  %v690_v54 = vmax.f32 %v658_v15, 0.0  ;;  %v659_v35 = vadd.f32 3.0, %v565_v19  ;;  %v819_v36 = vld [vmem:[#allocation2 + $0x1f] sm:$0xff]  ;;  %v820_v37 = vld [vmem:[#allocation2 + $0x27] sm:$0xff]  ;;  %v3229_v45 = vmul.f32 %v3149_v27, %v818_v22  ;;  %v3232_v48 = vmul.f32 %v3149_v27, %v821_v30  ;;  %v3242_v22 = vpop.permute.xlu1 %1170 }
  0xfd   : > { %789 = vst.msk [vmem:[#allocation2 + $0x40] sm:$0xff] %vm307_vm2, %v749_v23  ;;  %v688_v12 = vmax.f32 %v656_v26, 0.0  ;;  %v657_v43 = vadd.f32 3.0, %v557_v29  ;;  %v3235_v8 = vmul.f32 %v3149_v27, %v819_v36  ;;  %v923_v57 = vmul.f32 %v3155_v38, %v819_v36  ;;  %4464 = vst [vmem:[#allocation19_spill] sm:$0xff] %v3242_v22 }
  0xfe   : > { %v722_v50 = vmin.f32 %v690_v54, 6.0  ;;  %v691_v51 = vmax.f32 %v659_v35, 0.0  ;;  %v3239_v23 = vmul.f32 %v3149_v27, %v820_v37  ;;  %v954_v26 = vadd.f32 %v922_v17, %v3161_v44 }
  0xff   : > { %v720_v42 = vmin.f32 %v688_v12, 6.0  ;;  %v689_v15 = vmax.f32 %v657_v43, 0.0  ;;  %v2694_v20 = vpop.f32.mrb[12].mxu0  ;;  %v955_v18 = vadd.f32 %v923_v57, %v3177_v21  ;;  %v992_v7 = vmul.f32 %v3184_v28, %v820_v37 }
 0x100   : > { %v754_v13 = vmul.f32 %v722_v50, %v562_v46  ;;  %v723_v39 = vmin.f32 %v691_v51, 6.0  ;;  %v578_v54 = vadd.f32 %v2694_v20, %v3131_v9  ;;  %v569_v35 = vpop.f32.mrb[13].mxu0  ;;  %v993_v51 = vmul.f32 %v3184_v28, %v821_v30  ;;  %v1314_v20 = vld [vmem:[#allocation2 + $0x18] sm:$0xff] }
 0x101   : > { %v752_v36 = vmul.f32 %v720_v42, %v554_v52  ;;  %v721_v12 = vmin.f32 %v689_v15, 6.0  ;;  %v570_v43 = vadd.f32 %v3131_v9, %v569_v35  ;;  %v2695_v24 = vpop.f32.mrb[14].mxu0  ;;  %v1024_v42 = vadd.f32 %v992_v7, %v954_v26  ;;  %v1315_v15 = vld [vmem:[#allocation2 + $0x20] sm:$0xff]  ;;  %v3266_v7 = vpop.permute.xlu1 %1180 }
 0x102   : > { %794 = vst.msk [vmem:[#allocation2 + $0x68] sm:$0xff] %vm307_vm2, %v754_v13  ;;  %v755_v44 = vmul.f32 %v723_v39, %v565_v19  ;;  %v662_v17 = vadd.f32 3.0, %v578_v54  ;;  %v581_v46 = vadd.f32 %v2695_v24, %v3131_v9  ;;  %v572_v50 = vpop.f32.mrb[15].mxu0  ;;  %v3257_v39 = vmul.f32 %v3155_v38, %v820_v37  ;;  %4466 = vst [vmem:[#allocation21_spill] sm:$0xff] %v3266_v7  ;;  %v1317_v37 = vld [vmem:[#allocation2 + $0x30] sm:$0xff] }
 0x103   : > { %792 = vst.msk [vmem:[#allocation2 + $0x58] sm:$0xff] %vm307_vm2, %v752_v36  ;;  %v753_v21 = vmul.f32 %v721_v12, %v557_v29  ;;  %v660_v52 = vadd.f32 3.0, %v570_v43  ;;  %v573_v57 = vadd.f32 %v3131_v9, %v572_v50  ;;  %v1025_v19 = vadd.f32 %v993_v51, %v955_v18 }
 0x104   : > { %795 = vst.msk [vmem:[#allocation2 + $0x70] sm:$0xff] %vm307_vm2, %v755_v44  ;;  %v694_v35 = vmax.f32 %v662_v17, 0.0  ;;  %v663_v13 = vadd.f32 3.0, %v581_v46  ;;  %v3261_v36 = vmul.f32 %v3155_v38, %v821_v30  ;;  %v3264_v29 = vmul.f32 %v3168_v5, %v1314_v20  ;;  %v3274_v17 = vpop.permute.xlu0 %1195 }
 0x105   : > { %793 = vst.msk [vmem:[#allocation2 + $0x60] sm:$0xff] %vm307_vm2, %v753_v21  ;;  %v692_v24 = vmax.f32 %v660_v52, 0.0  ;;  %v661_v16 = vadd.f32 3.0, %v573_v57  ;;  %v3269_v44 = vmul.f32 %v3122_v6, %v1024_v42  ;;  %v3272_v18 = vmul.f32 %v3168_v5, %v1315_v15  ;;  %4467 = vst [vmem:[#allocation22_spill] sm:$0xff] %v3274_v17 }
 0x106   : > { %v726_v26 = vmin.f32 %v694_v35, 6.0  ;;  %v695_v12 = vmax.f32 %v663_v13, 0.0  ;;  %v1418_v21 = vmul.f32 %v3195_v41, %v1314_v20  ;;  %v1419_v52 = vmul.f32 %v3195_v41, %v1315_v15 }
 0x107   : > { %v724_v50 = vmin.f32 %v692_v24, 6.0  ;;  %v693_v51 = vmax.f32 %v661_v16, 0.0  ;;  %v2698_v30 = vpop.f32.mrb[16].mxu0  ;;  %v1249_v6 = vmul.f32 %v3135_v14, %v1025_v19  ;;  %v3282_v24 = vmul.f32 %v3168_v5, %v1317_v37 }
 0x108   : > { %v758_v22 = vmul.f32 %v726_v26, %v578_v54  ;;  %v727_v7 = vmin.f32 %v695_v12, 6.0  ;;  %v594_v35 = vadd.f32 %v2698_v30, %v3131_v9  ;;  %v585_v13 = vpop.f32.mrb[17].mxu0  ;;  %v1450_v26 = vadd.f32 %v1418_v21, %v3188_v32  ;;  %v3290_v30 = vpop.permute.xlu1 %1185 }
 0x109   : > { %v756_v42 = vmul.f32 %v724_v50, %v570_v43  ;;  %v725_v4 = vmin.f32 %v693_v51, 6.0  ;;  %v586_v2 = vadd.f32 %v3131_v9, %v585_v13  ;;  %v2699_v1 = vpop.f32.mrb[18].mxu0  ;;  %v1451_v12 = vadd.f32 %v1419_v52, %v3192_v40  ;;  %v1585_v50 = vld [vmem:[#allocation2 + $0x11] sm:$0xff]  ;;  %v1586_v51 = vld [vmem:[#allocation2 + $0x19] sm:$0xff]  ;;  %4468 = vst [vmem:[#allocation23_spill] sm:$0xff] %v3290_v30  ;;  %v1587_v52 = vld [vmem:[#allocation2 + $0x21] sm:$0xff] }
 0x10a   : > { %798 = vst.msk [vmem:[#allocation2 + $0x88] sm:$0xff] %vm307_vm2, %v758_v22  ;;  %v759_v16 = vmul.f32 %v727_v7, %v581_v46  ;;  %v666_v20 = vadd.f32 3.0, %v594_v35  ;;  %v597_v54 = vadd.f32 %v2699_v1, %v3131_v9  ;;  %v588_v15 = vpop.f32.mrb[19].mxu0  ;;  %v3295_v1 = vmul.f32 %v3195_v41, %v3202_v10 }
 0x10b   : > { %796 = vst.msk [vmem:[#allocation2 + $0x78] sm:$0xff] %vm307_vm2, %v756_v42  ;;  %v757_v14 = vmul.f32 %v725_v4, %v573_v57  ;;  %v664_v43 = vadd.f32 3.0, %v586_v2  ;;  %v589_v19 = vadd.f32 %v3131_v9, %v588_v15  ;;  %v3298_v32 = vmul.f32 %v3195_v41, %v1317_v37  ;;  %v3300_v4 = vpop.permute.xlu0 %1215 }
 0x10c   : > { %799 = vst.msk [vmem:[#allocation2 + $0x90] sm:$0xff] %vm307_vm2, %v759_v16  ;;  %v698_v22 = vmax.f32 %v666_v20, 0.0  ;;  %v667_v46 = vadd.f32 3.0, %v597_v54  ;;  %4469 = vst [vmem:[#allocation24_spill] sm:$0xff] %v3300_v4  ;;  %v1488_v7 = vmul.f32 %v3199_v49, %v3202_v10  ;;  %v1489_v21 = vmul.f32 %v3199_v49, %v1317_v37 }
 0x10d   : > { %797 = vst.msk [vmem:[#allocation2 + $0x80] sm:$0xff] %vm307_vm2, %v757_v14  ;;  %v696_v40 = vmax.f32 %v664_v43, 0.0  ;;  %v665_v57 = vadd.f32 3.0, %v589_v19  ;;  %v1621_v16 = vmul.f32 %v3205_v11, %v1585_v50  ;;  %v3308_v20 = vmul.f32 %v3205_v11, %v1586_v51  ;;  %v3310_v43 = vpop.permute.xlu1 %1893 }
 0x10e   : > { %v730_v13 = vmin.f32 %v698_v22, 6.0  ;;  %v699_v42 = vmax.f32 %v667_v46, 0.0  ;;  %v1520_v3 = vadd.f32 %v1488_v7, %v1450_v26  ;;  %v1521_v14 = vadd.f32 %v1489_v21, %v1451_v12  ;;  %4470 = vst [vmem:[#allocation25_spill] sm:$0xff] %v3310_v43  ;;  %v3320_v26 = vld [vmem:[#allocation2 + $0x29] sm:$0xff]  ;;  %v3324_v21 = vld [vmem:[#allocation2 + $0x31] sm:$0xff] }
 0x10f   : > { %v728_v15 = vmin.f32 %v696_v40, 6.0  ;;  %v697_v17 = vmax.f32 %v665_v57, 0.0  ;;  %v2702_v30 = vpop.f32.mrb[20].mxu0  ;;  %v3314_v22 = vmul.f32 %v3205_v11, %v1587_v52 }
 0x110   : > { %v762_v25 = vmul.f32 %v730_v13, %v594_v35  ;;  %v731_v0 = vmin.f32 %v699_v42, 6.0  ;;  %v610_v10 = vadd.f32 %v2702_v30, %v3131_v9  ;;  %v601_v37 = vpop.f32.mrb[21].mxu0  ;;  %v3318_v40 = vadd.f32 %v1520_v3, %v3269_v44 }
 0x111   : > { %v760_v46 = vmul.f32 %v728_v15, %v586_v2  ;;  %v729_v50 = vmin.f32 %v697_v17, 6.0  ;;  %v602_v63 = vadd.f32 %v3131_v9, %v601_v37  ;;  %v2703_v61 = vpop.f32.mrb[22].mxu0  ;;  %v1553_v7 = vadd.f32 %v1521_v14, %v1249_v6  ;;  %v3326_v2 = vpop.permute.xlu0 %1235 }
 0x112   : > { %802 = vst.msk [vmem:[#allocation2 + $0xa8] sm:$0xff] %vm307_vm2, %v762_v25  ;;  %v763_v35 = vmul.f32 %v731_v0, %v597_v54  ;;  %v670_v12 = vadd.f32 3.0, %v610_v10  ;;  %v613_v30 = vadd.f32 %v2703_v61, %v3131_v9  ;;  %v604_v57 = vpop.f32.mrb[23].mxu0  ;;  %4471 = vst [vmem:[#allocation26_spill] sm:$0xff] %v3326_v2  ;;  %v3333_v25 = vld [vmem:[%s4421_s3 + $0x8] ss:$0 sm:$0xff]  ;;  %v1690_v0 = vmul.f32 %v3212_v47, %v1586_v51  ;;  %v3348_v14 = vpop.permute.xlu1 %1897 }
 0x113   : > { %800 = vst.msk [vmem:[#allocation2 + $0x98] sm:$0xff] %vm307_vm2, %v760_v46  ;;  %v761_v17 = vmul.f32 %v729_v50, %v589_v19  ;;  %v668_v13 = vadd.f32 3.0, %v602_v63  ;;  %v605_v3 = vadd.f32 %v3131_v9, %v604_v57  ;;  %v1691_v6 = vmul.f32 %v3212_v47, %v1587_v52  ;;  %4472 = vst [vmem:[#allocation27_spill] sm:$0xff] %v3348_v14 }
 0x114   : > { %803 = vst.msk [vmem:[#allocation2 + $0xb0] sm:$0xff] %vm307_vm2, %v763_v35  ;;  %v702_v61 = vmax.f32 %v670_v12, 0.0  ;;  %v671_v44 = vadd.f32 3.0, %v613_v30  ;;  %v3340_v54 = vmul.f32 %v3212_v47, %v3320_v26  ;;  %v3345_v15 = vmul.f32 %v3212_v47, %v3324_v21 }
 0x115   : > { %801 = vst.msk [vmem:[#allocation2 + $0xa0] sm:$0xff] %vm307_vm2, %v761_v17  ;;  %v700_v19 = vmax.f32 %v668_v13, 0.0  ;;  %v669_v42 = vadd.f32 3.0, %v605_v3  ;;  %v1722_v51 = vadd.f32 %v1690_v0, %v3219_v31  ;;  %v1723_v50 = vadd.f32 %v1691_v6, %v1621_v16 }
 0x116   : > { %v734_v37 = vmin.f32 %v702_v61, 6.0  ;;  %v703_v46 = vmax.f32 %v671_v44, 0.0  ;;  %v1760_v52 = vmul.f32 %v3333_v25, %v3320_v26  ;;  %v1761_v17 = vmul.f32 %v3333_v25, %v3324_v21  ;;  %v1826_v44 = vpop.permute.xlu0 %1825 }
 0x117   : > { %v732_v35 = vmin.f32 %v700_v19, 6.0  ;;  %v701_v12 = vmax.f32 %v669_v42, 0.0  ;;  %v2706_v57 = vpop.f32.mrb[24].mxu0  ;;  %v956_v13 = vadd.f32 %v3257_v39, %v3229_v45 }
 0x118   : > { %v766_v43 = vmul.f32 %v734_v37, %v610_v10  ;;  %v735_v2 = vmin.f32 %v703_v46, 6.0  ;;  %v626_v31 = vadd.f32 %v2706_v57, %v3131_v9  ;;  %v1792_v0 = vadd.f32 %v1760_v52, %v1722_v51  ;;  %v617_v61 = vpop.f32.mrb[25].mxu0  ;;  %v3360_v10 = vld [vmem:[#allocation2 + $0x37] sm:$0xff] }
 0x119   : > { %v764_v16 = vmul.f32 %v732_v35, %v602_v63  ;;  %v733_v6 = vmin.f32 %v701_v12, 6.0  ;;  %v1793_v14 = vadd.f32 %v1761_v17, %v1723_v50  ;;  %v618_v19 = vadd.f32 %v3131_v9, %v617_v61  ;;  %v2707_v42 = vpop.f32.mrb[26].mxu0  ;;  %v3366_v63 = vld [vmem:[%s4422_s4] ss:$0 sm:$0xff] }
 0x11a   : > { %806 = vst.msk [vmem:[#allocation2 + $0xc8] sm:$0xff] %vm307_vm2, %v766_v43  ;;  %v767_v60 = vmul.f32 %v735_v2, %v613_v30  ;;  %v674_v4 = vadd.f32 3.0, %v626_v31  ;;  %v1952_v5 = vmul.f32 %v1826_v44, %v1792_v0  ;;  %v629_v45 = vadd.f32 %v2707_v42, %v3131_v9  ;;  %v620_v39 = vpop.f32.mrb[27].mxu0  ;;  %v3370_v30 = vld [vmem:[#allocation2 + $0x3f] sm:$0xff]  ;;  %v3372_v2 = vpop.permute.xlu1 %1190 }
 0x11b   : > { %804 = vst.msk [vmem:[#allocation2 + $0xb8] sm:$0xff] %vm307_vm2, %v764_v16  ;;  %v765_v51 = vmul.f32 %v733_v6, %v605_v3  ;;  %v1953_v37 = vmul.f32 %v3092_v56, %v1793_v14  ;;  %v672_v46 = vadd.f32 3.0, %v618_v19  ;;  %v621_v43 = vadd.f32 %v3131_v9, %v620_v39  ;;  %4473 = vst [vmem:[#allocation28_spill] sm:$0xff] %v3372_v2  ;;  %v3385_v42 = vld [vmem:[#allocation2 + $0x38] sm:$0xff] }
 0x11c   : > { %807 = vst.msk [vmem:[#allocation2 + $0xd0] sm:$0xff] %vm307_vm2, %v767_v60  ;;  %v706_v50 = vmax.f32 %v674_v4, 0.0  ;;  %v1984_v52 = vadd.f32 %v1952_v5, %v3318_v40  ;;  %v675_v3 = vadd.f32 3.0, %v629_v45  ;;  %v957_v35 = vadd.f32 %v3261_v36, %v3235_v8 }
 0x11d   : > { %805 = vst.msk [vmem:[#allocation2 + $0xc0] sm:$0xff] %vm307_vm2, %v765_v51  ;;  %v1985_v12 = vadd.f32 %v1953_v37, %v1553_v7  ;;  %v704_v56 = vmax.f32 %v672_v46, 0.0  ;;  %v673_v14 = vadd.f32 3.0, %v621_v43  ;;  %v994_v57 = vmul.f32 %v3184_v28, %v3360_v10  ;;  %v1838_v51 = vpop.permute.xlu0 %1837 }
 0x11e   : > { %v738_v17 = vmin.f32 %v706_v50, 6.0  ;;  %v2022_v0 = vadd.f32 %v3366_v63, %v1984_v52  ;;  %v707_v61 = vmax.f32 %v675_v3, 0.0  ;;  %v995_v60 = vmul.f32 %v3184_v28, %v3370_v30  ;;  %v3390_v3 = vld [vmem:[#allocation2 + $0x40] sm:$0xff] }
 0x11f   : > { %v2023_v5 = vadd.f32 %v3366_v63, %v1985_v12  ;;  %v736_v4 = vmin.f32 %v704_v56, 6.0  ;;  %v705_v40 = vmax.f32 %v673_v14, 0.0  ;;  %v1026_v8 = vadd.f32 %v994_v57, %v956_v13  ;;  %v2710_v36 = vpop.f32.mrb[28].mxu0  ;;  %v3394_v13 = vpop.permute.xlu1 %1200  ;;  %v3400_v57 = vld [vmem:[#allocation2 + $0x39] sm:$0xff] }
 0x120   : > { %v770_v44 = vmul.f32 %v738_v17, %v626_v31  ;;  %v2054_v7 = vadd.f32 3.0, %v2022_v0  ;;  %v739_v16 = vmin.f32 %v707_v61, 6.0  ;;  %v1027_v6 = vadd.f32 %v995_v60, %v957_v35  ;;  %v3387_v39 = vpop.f32.mrb[29].mxu0  ;;  %4474 = vst [vmem:[#allocation29_spill] sm:$0xff] %v3394_v13 }
 0x121   : > { %v2055_v37 = vadd.f32 3.0, %v2023_v5  ;;  %v768_v46 = vmul.f32 %v736_v4, %v618_v19  ;;  %v737_v50 = vmin.f32 %v705_v40, 6.0  ;;  %v1250_v52 = vmul.f32 %v3083_v53, %v1026_v8  ;;  %v3392_v12 = vpop.f32.mrb[30].mxu0  ;;  %v3402_v19 = vld [vmem:[#allocation2 + $0x41] sm:$0xff] }
 0x122   : > { %810 = vst.msk [vmem:[#allocation2 + $0xe8] sm:$0xff] %vm307_vm2, %v770_v44  ;;  %v2086_v31 = vmax.f32 %v2054_v7, 0.0  ;;  %v771_v35 = vmul.f32 %v739_v16, %v629_v45  ;;  %v1251_v56 = vmul.f32 %v3090_v55, %v1027_v6  ;;  %v1452_v14 = vadd.f32 %v3295_v1, %v3264_v29  ;;  %v3404_v53 = vpop.f32.mrb[31].mxu0  ;;  %v3424_v16 = vld [vmem:[#allocation2 + $0x47] sm:$0xff] }
 0x123   : > { %v2087_v17 = vmax.f32 %v2055_v37, 0.0  ;;  %808 = vst.msk [vmem:[#allocation2 + $0xd8] sm:$0xff] %vm307_vm2, %v768_v46  ;;  %v769_v61 = vmul.f32 %v737_v50, %v621_v43  ;;  %v1453_v60 = vadd.f32 %v3298_v32, %v3272_v18  ;;  %v1490_v45 = vmul.f32 %v3199_v49, %v3385_v42  ;;  %v3428_v37 = vld [vmem:[#allocation2 + $0x4f] sm:$0xff]  ;;  %v3430_v46 = vpop.permute.xlu0 %1841  ;;  %v3432_v50 = vpop.permute.xlu1 %1205 }
 0x124   : > { %v2118_v55 = vmin.f32 %v2086_v31, 6.0  ;;  %811 = vst.msk [vmem:[#allocation2 + $0xf0] sm:$0xff] %vm307_vm2, %v771_v35  ;;  %v1491_v29 = vmul.f32 %v3199_v49, %v3390_v3  ;;  %v1724_v1 = vadd.f32 %v3340_v54, %v3308_v20  ;;  %v1725_v4 = vadd.f32 %v3345_v15, %v3314_v22  ;;  %4475 = vst [vmem:[#allocation30_spill] sm:$0xff] %v3432_v50 }
 0x125   : > { %v2119_v40 = vmin.f32 %v2087_v17, 6.0  ;;  %809 = vst.msk [vmem:[#allocation2 + $0xe0] sm:$0xff] %vm307_vm2, %v769_v61  ;;  %v1522_v43 = vadd.f32 %v1490_v45, %v1452_v14  ;;  %v1762_v18 = vmul.f32 %v3333_v25, %v3400_v57  ;;  %v1763_v32 = vmul.f32 %v3333_v25, %v3402_v19 }
 0x126   : > { %v2150_v8 = vmul.f32 %v2118_v55, %v2022_v0  ;;  %v1523_v44 = vadd.f32 %v1491_v29, %v1453_v60  ;;  %v642_v7 = vadd.f32 %v2710_v36, %v3131_v9  ;;  %v926_v20 = vmul.f32 %v3155_v38, %v3360_v10 }
 0x127   : > { %v2151_v22 = vmul.f32 %v2119_v40, %v2023_v5  ;;  %v1554_v54 = vadd.f32 %v1522_v43, %v1250_v52  ;;  %v1794_v15 = vadd.f32 %v1762_v18, %v1724_v1  ;;  %v1795_v6 = vadd.f32 %v1763_v32, %v1725_v4  ;;  %v3450_v1 = vpop.permute.xlu1 %1909 }
 0x128   : > { %v1555_v31 = vadd.f32 %v1523_v44, %v1251_v56  ;;  %v678_v0 = vadd.f32 3.0, %v642_v7  ;;  %v927_v36 = vmul.f32 %v3155_v38, %v3370_v30  ;;  %v958_v35 = vadd.f32 %v926_v20, %v3239_v23  ;;  %v3443_v56 = vld [vmem:[#allocation2 + $0x48] sm:$0xff]  ;;  %v3459_v44 = vld [vmem:[#allocation2 + $0x50] sm:$0xff] }
 0x129   : > { %v2182_v14 = vpack.c.bf16 %v2151_v22, %v2150_v8  ;;  %v1954_v17 = vmul.f32 %v3098_v58, %v1794_v15  ;;  %v1955_v5 = vmul.f32 %v1838_v51, %v1795_v6  ;;  %v996_v52 = vmul.f32 %v3184_v28, %v3424_v16  ;;  %v3463_v22 = vld [vmem:[#allocation2 + $0x49] sm:$0xff] }
 0x12a   : > { %v710_v61 = vmax.f32 %v678_v0, 0.0  ;;  %v959_v60 = vadd.f32 %v927_v36, %v3232_v48  ;;  %v997_v45 = vmul.f32 %v3184_v28, %v3428_v37  ;;  %v1422_v55 = vmul.f32 %v3195_v41, %v3385_v42 }
 0x12b   : > { %2716 = vmatprep.mubr.msk.bf16.mxu1 %vm307_vm2, %v2182_v14  ;;  %v1986_v23 = vadd.f32 %v1954_v17, %v1554_v54  ;;  %v1987_v29 = vadd.f32 %v1955_v5, %v1555_v31  ;;  %v1028_v58 = vadd.f32 %v996_v52, %v958_v35  ;;  %v1423_v51 = vmul.f32 %v3195_v41, %v3390_v3  ;;  %v3465_v54 = vld [vmem:[#allocation2 + $0x51] sm:$0xff] }
 0x12c   : > { %v1624_v48 = vmul.f32 %v3205_v11, %v3320_v26  ;;  %v742_v4 = vmin.f32 %v710_v61, 6.0  ;;  %v1029_v40 = vadd.f32 %v997_v45, %v959_v60  ;;  %v1454_v43 = vadd.f32 %v1422_v55, %v3225_v33  ;;  %v3467_v26 = vpop.permute.xlu0 %1853  ;;  %v3483_v61 = vpop.permute.xlu1 %1913 }
 0x12d   : > { %v1625_v18 = vmul.f32 %v3205_v11, %v3324_v21  ;;  %v2024_v32 = vadd.f32 %v3366_v63, %v1986_v23  ;;  %v2025_v8 = vadd.f32 %v3366_v63, %v1987_v29  ;;  %v1492_v20 = vmul.f32 %v3199_v49, %v3443_v56  ;;  %4476 = vst [vmem:[#allocation31_spill] sm:$0xff] %v3483_v61 }
 0x12e   : > { %v774_v15 = vmul.f32 %v742_v4, %v642_v7  ;;  %v1252_v33 = vmul.f32 %v3100_v59, %v1028_v58  ;;  %v1253_v21 = vmul.f32 %v3152_v34, %v1029_v40  ;;  %v1455_v6 = vadd.f32 %v1423_v51, %v3282_v24 }
 0x12f   : > { %v2056_v31 = vadd.f32 3.0, %v2024_v32  ;;  %v2057_v0 = vadd.f32 3.0, %v2025_v8  ;;  %v1694_v36 = vmul.f32 %v3212_v47, %v3400_v57  ;;  %v1695_v35 = vmul.f32 %v3212_v47, %v3402_v19 }
 0x130   : > { %814 = vst.msk [vmem:[#allocation2 + $0x108] sm:$0xff] %vm307_vm2, %v774_v15  ;;  %v1493_v14 = vmul.f32 %v3199_v49, %v3459_v44  ;;  %v1524_v7 = vadd.f32 %v1492_v20, %v1454_v43  ;;  %v1764_v59 = vmul.f32 %v3333_v25, %v3463_v22  ;;  %v1765_v34 = vmul.f32 %v3333_v25, %v3465_v54  ;;  %v3487_v4 = vpop.permute.xlu0 %1857 }
 0x131   : > { %v2088_v24 = vmax.f32 %v2056_v31, 0.0  ;;  %v2089_v17 = vmax.f32 %v2057_v0, 0.0  ;;  %v1726_v5 = vadd.f32 %v1694_v36, %v1624_v48  ;;  %v1727_v52 = vadd.f32 %v1695_v35, %v1625_v18  ;;  %4477 = vst [vmem:[#allocation32_spill] sm:$0xff] %v3487_v4  ;;  %v3491_v36 = vld [vmem:[#allocation2 + $0xdf] sm:$0xff] }
 0x132   : > { %v1525_v60 = vadd.f32 %v1493_v14, %v1455_v6  ;;  %v1556_v45 = vadd.f32 %v1524_v7, %v1252_v33  ;;  %v634_v55 = vadd.f32 %v3131_v9, %v3387_v39  ;;  %4478 = vst [vmem:[#allocation33_spill] sm:$0xff] %v3491_v36  ;;  %v3493_v39 = vpop.permute.xlu1 %1210  ;;  %v841_v14 = vld [vmem:[#allocation2 + $0xcf] sm:$0xff]  ;;  %v947_v7 = vmul.f32 %v3155_v38, %v3491_v36 }
 0x133   : > { %v2120_v23 = vmin.f32 %v2088_v24, 6.0  ;;  %v2121_v29 = vmin.f32 %v2089_v17, 6.0  ;;  %v1796_v58 = vadd.f32 %v1764_v59, %v1726_v5  ;;  %v1797_v51 = vadd.f32 %v1765_v34, %v1727_v52  ;;  %4479 = vst [vmem:[#allocation34_spill] sm:$0xff] %v3493_v39  ;;  %v837_v24 = vld [vmem:[#allocation2 + $0xaf] sm:$0xff] }
 0x134   : > { %v1557_v40 = vadd.f32 %v1525_v60, %v1253_v21  ;;  %v676_v43 = vadd.f32 3.0, %v634_v55  ;;  %v877_v17 = vmul.f32 %v3149_v27, %v841_v14  ;;  %v3535_v39 = vld [vmem:[#allocation2 + $0xf0] sm:$0xff]  ;;  %v929_v13 = vmul.f32 %v3155_v38, %v3428_v37 }
 0x135   : > { %v2152_v20 = vmul.f32 %v2120_v23, %v2024_v32  ;;  %v2153_v15 = vmul.f32 %v2121_v29, %v2025_v8  ;;  %v1956_v48 = vmul.f32 %v3430_v46, %v1796_v58  ;;  %v1957_v18 = vmul.f32 %v3108_v62, %v1797_v51  ;;  %v839_v8 = vld [vmem:[#allocation2 + $0xbf] sm:$0xff]  ;;  %v3498_v46 = vpop.permute.xlu0 %1869  ;;  %4485 = vst [vmem:[#allocation38_spill] sm:$0xff] %v3535_v39 }
 0x136   : > { %v708_v31 = vmax.f32 %v676_v43, 0.0  ;;  %4480 = vst [vmem:[#allocation35_spill] sm:$0xff] %v3498_v46  ;;  %v943_v5 = vmul.f32 %v3155_v38, %v839_v8  ;;  %v3507_v23 = vld [vmem:[#allocation2 + $0xe0] sm:$0xff]  ;;  %v3509_v29 = vpop.permute.xlu1 %1220  ;;  %v875_v58 = vmul.f32 %v3149_v27, %v839_v8  ;;  %v945_v51 = vmul.f32 %v3155_v38, %v841_v14 }
 0x137   : > { %v2183_v6 = vpack.c.bf16 %v2153_v15, %v2152_v20  ;;  %v1988_v33 = vadd.f32 %v1956_v48, %v1556_v45  ;;  %v1989_v0 = vadd.f32 %v1957_v18, %v1557_v40  ;;  %v3505_v45 = vld [vmem:[#allocation2 + $0xef] sm:$0xff]  ;;  %v979_v40 = vadd.f32 %v947_v7, %v877_v17 }
 0x138   : > { %v740_v35 = vmin.f32 %v708_v31, 6.0  ;;  %4481 = vst [vmem:[#allocation36_spill] sm:$0xff] %v3505_v45  ;;  %v3514_v15 = vld [vmem:[#allocation2 + $0xd0] sm:$0xff]  ;;  %v1015_v31 = vmul.f32 %v3184_v28, %v3491_v36  ;;  %v4483_v17 = vld [vmem:[#allocation14_spill] sm:$0xff] }
 0x139   : > { %2717 = vmatmul.mubr.msk.bf16.vlgmr.msra.gmra.mrb[0].mxu1 %vm307_vm2, %v2183_v6  ;;  %v2026_v21 = vadd.f32 %v3366_v63, %v1988_v33  ;;  %v2027_v32 = vadd.f32 %v3366_v63, %v1989_v0  ;;  %v3516_v48 = vpop.permute.xlu0 %1873  ;;  %v1017_v6 = vmul.f32 %v3184_v28, %v3505_v45  ;;  %v1443_v33 = vmul.f32 %v3195_v41, %v3507_v23  ;;  %v3524_v0 = vld [vmem:[#allocation2 + $0xd1] sm:$0xff] }
 0x13a   : > { %v772_v62 = vmul.f32 %v740_v35, %v634_v55  ;;  %v873_v55 = vmul.f32 %v3149_v27, %v837_v24  ;;  %4482 = vst [vmem:[#allocation37_spill] sm:$0xff] %v3516_v48  ;;  %v3526_v35 = vld [vmem:[#allocation2 + $0xe1] sm:$0xff]  ;;  %v1333_v7 = vld [vmem:[#allocation2 + $0xb0] sm:$0xff] }
 0x13b   : > { %v2058_v59 = vadd.f32 3.0, %v2026_v21  ;;  %v2059_v34 = vadd.f32 3.0, %v2027_v32  ;;  %v1049_v24 = vadd.f32 %v1017_v6, %v979_v40  ;;  %v3550_v40 = vmul.f32 %v4483_v17, %v1333_v7 }
 0x13c   : > { %812 = vst.msk [vmem:[#allocation2 + $0xf8] sm:$0xff] %vm307_vm2, %v772_v62  ;;  %v975_v18 = vadd.f32 %v943_v5, %v873_v55  ;;  %v1373_v5 = vmul.f32 %v4483_v17, %v3514_v15  ;;  %v1335_v55 = vld [vmem:[#allocation2 + $0xc0] sm:$0xff] }
 0x13d   : > { %v2090_v52 = vmax.f32 %v2058_v59, 0.0  ;;  %v2091_v60 = vmax.f32 %v2059_v34, 0.0  ;;  %v977_v59 = vadd.f32 %v945_v51, %v875_v58  ;;  %v1013_v34 = vmul.f32 %v3184_v28, %v841_v14  ;;  %v3543_v14 = vpop.permute.xlu1 %1225 }
 0x13e   : > { %4487 = vst [vmem:[#allocation40_spill] sm:$0xff] %v3543_v14  ;;  %v3563_v7 = vmul.f32 %v4483_v17, %v1335_v55 }
 0x13f   : > { %v2122_v43 = vmin.f32 %v2090_v52, 6.0  ;;  %v2123_v20 = vmin.f32 %v2091_v60, 6.0  ;;  %v3533_v60 = vmul.f32 %v3155_v38, %v3505_v45  ;;  %v3545_v58 = vadd.f32 %v1013_v34, %v975_v18  ;;  %v3559_v18 = vpop.permute.xlu0 %1885  ;;  %v3587_v45 = vld [vmem:[#allocation2 + $0x58] sm:$0xff] }
 0x140   : > { %v3547_v51 = vadd.f32 %v1015_v31, %v977_v59  ;;  %4490 = vst [vmem:[#allocation43_spill] sm:$0xff] %v3559_v18  ;;  %v4491_v31 = vld [vmem:[#allocation24_spill] sm:$0xff]  ;;  %v1513_v34 = vmul.f32 %v3199_v49, %v3535_v39 }
 0x141   : > { %v2154_v8 = vmul.f32 %v2122_v43, %v2026_v21  ;;  %v2155_v62 = vmul.f32 %v2123_v20, %v2027_v32  ;;  %4484 = vst [vmem:[#allocation14_spill] sm:$0xff] %v3533_v60  ;;  %v1645_v21 = vmul.f32 %v3205_v11, %v3524_v0  ;;  %v1715_v32 = vmul.f32 %v3212_v47, %v3526_v35 }
 0x142   : > { %4488 = vst [vmem:[#allocation41_spill] sm:$0xff] %v3545_v58  ;;  %4489 = vst [vmem:[#allocation42_spill] sm:$0xff] %v3547_v51  ;;  %v1475_v43 = vadd.f32 %v1443_v33, %v1373_v5  ;;  %v1273_v59 = vmul.f32 %v4491_v31, %v1049_v24  ;;  %v3567_v33 = vmul.f32 %v4483_v17, %v3507_v23  ;;  %v3571_v5 = vld [vmem:[#allocation2 + $0x57] sm:$0xff]  ;;  %v1926_v24 = vpop.permute.xlu1 %1925 }
 0x143   : > { %v2184_v52 = vpack.c.bf16 %v2155_v62, %v2154_v8  ;;  %v3537_v50 = vld [vmem:[#allocation2 + $0xf1] sm:$0xff]  ;;  %v1747_v20 = vadd.f32 %v1715_v32, %v1645_v21  ;;  %v645_v8 = vadd.f32 %v3392_v12, %v3131_v9  ;;  %v637_v62 = vadd.f32 %v3131_v9, %v3404_v53  ;;  %v3573_v9 = vld [vmem:[#allocation2 + $0x5f] sm:$0xff] }
 0x144   : > { %4486 = vst [vmem:[#allocation39_spill] sm:$0xff] %v3537_v50  ;;  %v1785_v6 = vmul.f32 %v3333_v25, %v3537_v50  ;;  %v859_v53 = vmul.f32 %v3149_v27, %v3370_v30  ;;  %v1545_v32 = vadd.f32 %v1513_v34, %v1475_v43  ;;  %v858_v31 = vmul.f32 %v3149_v27, %v3360_v10 }
 0x145   : > { %2720 = vmatprep.mubr.msk.bf16.mxu1 %vm307_vm2, %v2184_v52  ;;  %v679_v52 = vadd.f32 3.0, %v645_v8  ;;  %v677_v21 = vadd.f32 3.0, %v637_v62  ;;  %v928_v51 = vmul.f32 %v3155_v38, %v3424_v16  ;;  %v998_v58 = vmul.f32 %v3184_v28, %v3571_v5 }
 0x146   : > { %v1817_v12 = vadd.f32 %v1785_v6, %v1747_v20  ;;  %v1577_v18 = vadd.f32 %v1545_v32, %v1273_v59  ;;  %v961_v30 = vadd.f32 %v929_v13, %v859_v53  ;;  %v999_v43 = vmul.f32 %v3184_v28, %v3573_v9  ;;  %v3595_v59 = vld [vmem:[#allocation2 + $0x60] sm:$0xff] }
 0x147   : > { %v711_v20 = vmax.f32 %v679_v52, 0.0  ;;  %v709_v6 = vmax.f32 %v677_v21, 0.0  ;;  %v960_v14 = vadd.f32 %v928_v51, %v858_v31  ;;  %v1354_v60 = vmul.f32 %v4483_v17, %v3385_v42  ;;  %v3593_v52 = vpop.permute.xlu0 %1889 }
 0x148   : > { %v1977_v2 = vmul.f32 %v1926_v24, %v1817_v12  ;;  %v1355_v12 = vmul.f32 %v4483_v17, %v3390_v3  ;;  %4492 = vst [vmem:[#allocation24_spill] sm:$0xff] %v3593_v52  ;;  %v1031_v24 = vadd.f32 %v999_v43, %v961_v30  ;;  %v1424_v13 = vmul.f32 %v3195_v41, %v3443_v56  ;;  %v3610_v52 = vld [vmem:[#allocation2 + $0x61] sm:$0xff] }
 0x149   : > { %v743_v34 = vmin.f32 %v711_v20, 6.0  ;;  %v741_v10 = vmin.f32 %v709_v6, 6.0  ;;  %v1030_v21 = vadd.f32 %v998_v58, %v960_v14  ;;  %v1425_v51 = vmul.f32 %v3195_v41, %v3459_v44  ;;  %v3602_v20 = vld [vmem:[#allocation2 + $0x59] sm:$0xff]  ;;  %v4493_v14 = vld [vmem:[#allocation3_spill] sm:$0xff] }
 0x14a   : > { %v1439_v53 = vmul.f32 %v3195_v41, %v1335_v55  ;;  %v2009_v32 = vadd.f32 %v1977_v2, %v1577_v18  ;;  %v1441_v3 = vmul.f32 %v3195_v41, %v3514_v15  ;;  %v4494_v6 = vld [vmem:[#allocation4_spill] sm:$0xff]  ;;  %v1494_v43 = vmul.f32 %v3199_v49, %v3587_v45  ;;  %4495 = vst [vmem:[#allocation3_spill] sm:$0xff] %v3610_v52  ;;  %v1607_v18 = vld [vmem:[#allocation2 + $0xc1] sm:$0xff] }
 0x14b   : > { %v775_v31 = vmul.f32 %v743_v34, %v645_v8  ;;  %v773_v42 = vmul.f32 %v741_v10, %v637_v62  ;;  %v1254_v58 = vmul.f32 %v4493_v14, %v1030_v21  ;;  %v1255_v30 = vmul.f32 %v4494_v6, %v1031_v24 }
 0x14c   : > { %v1456_v2 = vadd.f32 %v1424_v13, %v1354_v60  ;;  %v1457_v55 = vadd.f32 %v1425_v51, %v1355_v12  ;;  %v1495_v8 = vmul.f32 %v3199_v49, %v3595_v59  ;;  %v1626_v62 = vmul.f32 %v3205_v11, %v3400_v57  ;;  %v3635_v13 = vpop.permute.xlu0 %1901  ;;  %v3637_v51 = vld [vmem:[#allocation2 + $0xb1] sm:$0xff] }
 0x14d   : > { %815 = vst.msk [vmem:[#allocation2 + $0x110] sm:$0xff] %vm307_vm2, %v775_v31  ;;  %813 = vst.msk [vmem:[#allocation2 + $0x100] sm:$0xff] %vm307_vm2, %v773_v42  ;;  %v1627_v34 = vmul.f32 %v3205_v11, %v3402_v19  ;;  %v1696_v10 = vmul.f32 %v3212_v47, %v3463_v22  ;;  %v1697_v21 = vmul.f32 %v3212_v47, %v3465_v54 }
 0x14e   : > { %v1766_v60 = vmul.f32 %v3333_v25, %v3602_v20  ;;  %v1445_v12 = vmul.f32 %v3195_v41, %v3535_v39  ;;  %v1713_v24 = vmul.f32 %v3212_v47, %v3524_v0  ;;  %v3631_v57 = vadd.f32 %v3366_v63, %v2009_v32  ;;  %4497 = vst [vmem:[#allocation44_spill] sm:$0xff] %v3635_v13 }
 0x14f   : > { %v1767_v19 = vmul.f32 %v3333_v25, %v3610_v52  ;;  %4498 = vst [vmem:[#allocation45_spill] sm:$0xff] %v3637_v51  ;;  %v1526_v31 = vadd.f32 %v1494_v43, %v1456_v2  ;;  %v1527_v42 = vadd.f32 %v1495_v8, %v1457_v55  ;;  %v1728_v14 = vadd.f32 %v1696_v10, %v1626_v62  ;;  %v4499_v55 = vld [vmem:[#allocation5_spill] sm:$0xff]  ;;  %v842_v10 = vld [vmem:[#allocation2 + $0xd7] sm:$0xff] }
 0x150   : > { %4496 = vst [vmem:[#allocation4_spill] sm:$0xff] %v3631_v57  ;;  %v1729_v6 = vadd.f32 %v1697_v21, %v1627_v34  ;;  %v1471_v61 = vadd.f32 %v1439_v53, %v3550_v40  ;;  %v1509_v39 = vmul.f32 %v3199_v49, %v3514_v15  ;;  %v1643_v36 = vmul.f32 %v3205_v11, %v1607_v18  ;;  %v3654_v62 = vld [vmem:[#allocation2 + $0xe7] sm:$0xff]  ;;  %v3669_v21 = vld [vmem:[#allocation2 + $0xb7] sm:$0xff] }
 0x151   : > { %v1711_v32 = vmul.f32 %v3212_v47, %v1607_v18  ;;  %v1558_v48 = vadd.f32 %v1526_v31, %v1254_v58  ;;  %v1559_v46 = vadd.f32 %v1527_v42, %v1255_v30  ;;  %v1798_v4 = vadd.f32 %v1766_v60, %v1728_v14  ;;  %v840_v30 = vld [vmem:[#allocation2 + $0xc7] sm:$0xff]  ;;  %4502 = vst [vmem:[#allocation47_spill] sm:$0xff] %v3669_v21 }
 0x152   : > { %v1799_v52 = vadd.f32 %v1767_v19, %v1729_v6  ;;  %v1641_v13 = vmul.f32 %v3205_v11, %v3637_v51  ;;  %v1745_v43 = vadd.f32 %v1713_v24, %v1643_v36  ;;  %v1781_v2 = vmul.f32 %v3333_v25, %v3524_v0 }
 0x153   : > { %v1783_v40 = vmul.f32 %v3333_v25, %v3526_v35  ;;  %v1473_v15 = vadd.f32 %v1441_v3, %v3563_v7  ;;  %v2079_v53 = vadd.f32 3.0, %v3631_v57  ;;  %v1958_v8 = vmul.f32 %v4499_v55, %v1798_v4  ;;  %v3663_v7 = vpop.permute.xlu0 %1905  ;;  %v3693_v55 = vld [vmem:[#allocation2 + $0xb8] sm:$0xff] }
 0x154   : > { %v1959_v58 = vmul.f32 %v3467_v26, %v1799_v52  ;;  %v3657_v18 = vadd.f32 %v1445_v12, %v3567_v33  ;;  %v1511_v36 = vmul.f32 %v3199_v49, %v3507_v23  ;;  %v3661_v0 = vadd.f32 %v1509_v39, %v1471_v61  ;;  %4501 = vst [vmem:[#allocation46_spill] sm:$0xff] %v3663_v7  ;;  %v3671_v33 = vld [vmem:[#allocation2 + $0xf7] sm:$0xff]  ;;  %v3778_v7 = vld [vmem:[#allocation2 + $0xc9] sm:$0xff] }
 0x155   : > { %v1743_v34 = vadd.f32 %v1711_v32, %v1641_v13  ;;  %v1647_v4 = vmul.f32 %v3205_v11, %v3526_v35  ;;  %v1717_v26 = vmul.f32 %v3212_v47, %v3537_v50  ;;  %v1990_v52 = vadd.f32 %v1958_v8, %v1558_v48  ;;  %4506 = vst [vmem:[#allocation51_spill] sm:$0xff] %v3693_v55  ;;  %v3695_v8 = vld [vmem:[#allocation2 + $0xc8] sm:$0xff] }
 0x156   : > { %4500 = vst [vmem:[#allocation5_spill] sm:$0xff] %v3661_v0  ;;  %v1991_v3 = vadd.f32 %v1959_v58, %v1559_v46  ;;  %v1815_v23 = vadd.f32 %v1783_v40, %v1745_v43  ;;  %v944_v61 = vmul.f32 %v3155_v38, %v840_v30  ;;  %v948_v39 = vmul.f32 %v3155_v38, %v3654_v62 }
 0x157   : > { %v1813_v60 = vadd.f32 %v1781_v2, %v1743_v34  ;;  %v2111_v12 = vmax.f32 %v2079_v53, 0.0  ;;  %v2028_v24 = vadd.f32 %v3366_v63, %v1990_v52  ;;  %v946_v19 = vmul.f32 %v3155_v38, %v842_v10  ;;  %4507 = vst [vmem:[#allocation52_spill] sm:$0xff] %v3695_v8  ;;  %v1918_v58 = vpop.permute.xlu0 %1917  ;;  %v1338_v52 = vld [vmem:[#allocation2 + $0xd8] sm:$0xff] }
 0x158   : > { %v2029_v35 = vadd.f32 %v3366_v63, %v1991_v3  ;;  %v874_v46 = vmul.f32 %v3149_v27, %v3669_v21  ;;  %v878_v48 = vmul.f32 %v3149_v27, %v842_v10  ;;  %v1014_v13 = vmul.f32 %v3184_v28, %v842_v10 }
 0x159   : > { %v1018_v31 = vmul.f32 %v3184_v28, %v3671_v33  ;;  %v3685_v42 = vadd.f32 %v1511_v36, %v1473_v15  ;;  %v2060_v14 = vadd.f32 3.0, %v2028_v24  ;;  %v876_v32 = vmul.f32 %v3149_v27, %v840_v30  ;;  %v3699_v30 = vld [vmem:[#allocation2 + $0xe8] sm:$0xff] }
 0x15a   : > { %v2061_v6 = vadd.f32 3.0, %v2029_v35  ;;  %v3688_v43 = vadd.f32 %v1717_v26, %v1647_v4  ;;  %v3691_v2 = vmul.f32 %v3450_v1, %v1813_v60  ;;  %v976_v40 = vadd.f32 %v944_v61, %v874_v46 }
 0x15b   : > { %4503 = vst [vmem:[#allocation48_spill] sm:$0xff] %v3685_v42  ;;  %v980_v53 = vadd.f32 %v948_v39, %v878_v48  ;;  %v2092_v34 = vmax.f32 %v2060_v14, 0.0  ;;  %v978_v15 = vadd.f32 %v946_v19, %v876_v32  ;;  %v1016_v36 = vmul.f32 %v3184_v28, %v3654_v62  ;;  %v4518_v42 = vld [vmem:[#allocation16_spill] sm:$0xff] }
 0x15c   : > { %4504 = vst [vmem:[#allocation49_spill] sm:$0xff] %v3688_v43  ;;  %4505 = vst [vmem:[#allocation50_spill] sm:$0xff] %v3691_v2  ;;  %v2093_v10 = vmax.f32 %v2061_v6, 0.0  ;;  %v3701_v4 = vmul.f32 %v1918_v58, %v1815_v23  ;;  %v3703_v1 = vmin.f32 %v2111_v12, 6.0  ;;  %v3705_v26 = vadd.f32 %v1014_v13, %v976_v40  ;;  %v3717_v13 = vld [vmem:[#allocation2 + $0x67] sm:$0xff] }
 0x15d   : > { %v1050_v3 = vadd.f32 %v1018_v31, %v980_v53  ;;  %v2124_v60 = vmin.f32 %v2092_v34, 6.0  ;;  %v1370_v39 = vmul.f32 %v4483_v17, %v3693_v55  ;;  %v1372_v19 = vmul.f32 %v4483_v17, %v3695_v8  ;;  %v3723_v53 = vld [vmem:[#allocation2 + $0xf8] sm:$0xff]  ;;  %v3752_v43 = vld [vmem:[#allocation2 + $0x68] sm:$0xff] }
 0x15e   : > { %4508 = vst [vmem:[#allocation53_spill] sm:$0xff] %v3701_v4  ;;  %4509 = vst [vmem:[#allocation54_spill] sm:$0xff] %v3703_v1  ;;  %v2125_v61 = vmin.f32 %v2093_v10, 6.0  ;;  %v1374_v46 = vmul.f32 %v4483_v17, %v1338_v52  ;;  %v1440_v48 = vmul.f32 %v3195_v41, %v3695_v8  ;;  %v1442_v23 = vmul.f32 %v3195_v41, %v1338_v52  ;;  %v3729_v34 = vld [vmem:[#allocation2 + $0xb9] sm:$0xff]  ;;  %v3731_v10 = vld [vmem:[#allocation2 + $0x6f] sm:$0xff] }
 0x15f   : > { %4510 = vst [vmem:[#allocation55_spill] sm:$0xff] %v3705_v26  ;;  %v1444_v12 = vmul.f32 %v3195_v41, %v3699_v30  ;;  %v2156_v31 = vmul.f32 %v2124_v60, %v2028_v24  ;;  %v3719_v6 = vadd.f32 %v1016_v36, %v978_v15  ;;  %v1510_v32 = vmul.f32 %v3199_v49, %v1338_v52  ;;  %v1610_v1 = vld [vmem:[#allocation2 + $0xd9] sm:$0xff] }
 0x160   : > { %v2157_v14 = vmul.f32 %v2125_v61, %v2029_v35  ;;  %v1274_v40 = vmul.f32 %v3509_v29, %v1050_v3  ;;  %v3727_v58 = vmul.f32 %v3199_v49, %v3699_v30  ;;  %4512 = vst [vmem:[#allocation57_spill] sm:$0xff] %v3729_v34  ;;  %v860_v24 = vmul.f32 %v3149_v27, %v3424_v16 }
 0x161   : > { %4511 = vst [vmem:[#allocation56_spill] sm:$0xff] %v3719_v6  ;;  %v930_v35 = vmul.f32 %v3155_v38, %v3571_v5  ;;  %v861_v29 = vmul.f32 %v3149_v27, %v3428_v37  ;;  %v931_v36 = vmul.f32 %v3155_v38, %v3573_v9  ;;  %v1000_v52 = vmul.f32 %v3184_v28, %v3717_v13 }
 0x162   : > { %v2185_v15 = vpack.c.bf16 %v2157_v14, %v2156_v31  ;;  %v1472_v3 = vadd.f32 %v1440_v48, %v1370_v39  ;;  %v3743_v60 = vadd.f32 %v1442_v23, %v1372_v19  ;;  %v1476_v61 = vadd.f32 %v1444_v12, %v1374_v46  ;;  %v3762_v12 = vld [vmem:[#allocation2 + $0xe9] sm:$0xff] }
 0x163   : > { %v962_v57 = vadd.f32 %v930_v35, %v860_v24  ;;  %v1514_v16 = vmul.f32 %v3199_v49, %v3723_v53  ;;  %v1642_v37 = vmul.f32 %v3205_v11, %v3729_v34  ;;  %v963_v31 = vadd.f32 %v931_v36, %v861_v29  ;;  %v3769_v29 = vld [vmem:[#allocation2 + $0x71] sm:$0xff] }
 0x164   : > { %2721 = vmatmul.mubr.msk.bf16.gmra.mrb[4].mxu1 %vm307_vm2, %v2185_v15  ;;  %v1001_v14 = vmul.f32 %v3184_v28, %v3731_v10  ;;  %v1356_v19 = vmul.f32 %v4483_v17, %v3443_v56  ;;  %v1426_v46 = vmul.f32 %v3195_v41, %v3587_v45  ;;  %v1427_v48 = vmul.f32 %v3195_v41, %v3595_v59  ;;  %v3765_v15 = vld [vmem:[#allocation2 + $0x70] sm:$0xff]  ;;  %v4514_v56 = vld [vmem:[#allocation6_spill] sm:$0xff] }
 0x165   : > { %v1032_v39 = vadd.f32 %v1000_v52, %v962_v57  ;;  %v3760_v23 = vadd.f32 %v1510_v32, %v1472_v3  ;;  %v1646_v24 = vmul.f32 %v3205_v11, %v1610_v1  ;;  %v1357_v57 = vmul.f32 %v4483_v17, %v3459_v44  ;;  %v3774_v32 = vld [vmem:[#allocation2 + $0x69] sm:$0xff]  ;;  %4515 = vst [vmem:[#allocation6_spill] sm:$0xff] %v3778_v7 }
 0x166   : > { %v1033_v35 = vadd.f32 %v1001_v14, %v963_v31  ;;  %v1458_v52 = vadd.f32 %v1426_v46, %v1356_v19  ;;  %v1496_v4 = vmul.f32 %v3199_v49, %v3752_v43  ;;  %v1628_v3 = vmul.f32 %v3205_v11, %v3463_v22  ;;  %v3780_v31 = vld [vmem:[#allocation2 + $0xf9] sm:$0xff]  ;;  %v4517_v19 = vld [vmem:[#allocation3_spill] sm:$0xff] }
 0x167   : > { %4513 = vst [vmem:[#allocation58_spill] sm:$0xff] %v3760_v23  ;;  %v1256_v36 = vmul.f32 %v4514_v56, %v1032_v39  ;;  %4516 = vst [vmem:[#allocation59_spill] sm:$0xff] %v3780_v31  ;;  %v1459_v14 = vadd.f32 %v1427_v48, %v1357_v57  ;;  %v1629_v44 = vmul.f32 %v3205_v11, %v3465_v54 }
 0x168   : > { %v1698_v39 = vmul.f32 %v3212_v47, %v3602_v20  ;;  %v1699_v46 = vmul.f32 %v3212_v47, %v4517_v19  ;;  %v1716_v56 = vmul.f32 %v3212_v47, %v3762_v12  ;;  %v1257_v23 = vmul.f32 %v4518_v42, %v1033_v35 }
 0x169   : > { %v1497_v22 = vmul.f32 %v3199_v49, %v3765_v15  ;;  %v1769_v48 = vmul.f32 %v3333_v25, %v3769_v29  ;;  %v1528_v57 = vadd.f32 %v1496_v4, %v1458_v52  ;;  %v1768_v26 = vmul.f32 %v3333_v25, %v3774_v32 }
 0x16a   : > { %v1730_v6 = vadd.f32 %v1698_v39, %v1628_v3  ;;  %v1731_v54 = vadd.f32 %v1699_v46, %v1629_v44  ;;  %v1546_v2 = vadd.f32 %v1514_v16, %v1476_v61  ;;  %v1712_v0 = vmul.f32 %v3212_v47, %v3778_v7  ;;  %v4519_v44 = vld [vmem:[#allocation32_spill] sm:$0xff]  ;;  %v4520_v46 = vld [vmem:[#allocation9_spill] sm:$0xff] }
 0x16b   : > { %v1714_v8 = vmul.f32 %v3212_v47, %v1610_v1  ;;  %v1786_v42 = vmul.f32 %v3333_v25, %v3780_v31  ;;  %v1529_v35 = vadd.f32 %v1497_v22, %v1459_v14  ;;  %v1560_v34 = vadd.f32 %v1528_v57, %v1256_v36 }
 0x16c   : > { %v1800_v55 = vadd.f32 %v1768_v26, %v1730_v6  ;;  %v1801_v21 = vadd.f32 %v1769_v48, %v1731_v54  ;;  %v3802_v51 = vadd.f32 %v1546_v2, %v1274_v40  ;;  %v1644_v4 = vmul.f32 %v3205_v11, %v3778_v7  ;;  %v3817_v26 = vld [vmem:[#allocation2 + $0x107] sm:$0xff]  ;;  %v3821_v40 = vld [vmem:[#allocation2 + $0x77] sm:$0xff] }
 0x16d   : > { %v1648_v61 = vmul.f32 %v3205_v11, %v3762_v12  ;;  %v1718_v16 = vmul.f32 %v3212_v47, %v3780_v31  ;;  %v1748_v52 = vadd.f32 %v1716_v56, %v1646_v24  ;;  %v1561_v3 = vadd.f32 %v1529_v35, %v1257_v23 }
 0x16e   : > { %v1960_v39 = vmul.f32 %v4519_v44, %v1800_v55  ;;  %v1961_v14 = vmul.f32 %v4520_v46, %v1801_v21  ;;  %v3812_v36 = vadd.f32 %v1712_v0, %v1642_v37  ;;  %v3815_v2 = vmul.f32 %v3333_v25, %v1610_v1  ;;  %v3827_v0 = vld [vmem:[#allocation2 + $0x7f] sm:$0xff] }
 0x16f   : > { %v950_v6 = vmul.f32 %v3155_v38, %v3671_v33  ;;  %v863_v24 = vmul.f32 %v3149_v27, %v3573_v9  ;;  %v3825_v23 = vadd.f32 %v1714_v8, %v1644_v4  ;;  %v1818_v55 = vadd.f32 %v1786_v42, %v1748_v52 }
 0x170   : > { %v1992_v56 = vadd.f32 %v1960_v39, %v1560_v34  ;;  %v1993_v21 = vadd.f32 %v1961_v14, %v1561_v3  ;;  %v880_v1 = vmul.f32 %v3149_v27, %v3654_v62  ;;  %v862_v37 = vmul.f32 %v3149_v27, %v3571_v5  ;;  %v1930_v62 = vpop.permute.xlu1 %1929  ;;  %v3849_v39 = vpop.permute.xlu0 %1921 }
 0x171   : > { %v932_v22 = vmul.f32 %v3155_v38, %v3717_v13  ;;  %v933_v48 = vmul.f32 %v3155_v38, %v3731_v10  ;;  %v1020_v34 = vmul.f32 %v3184_v28, %v3817_v26  ;;  %v1002_v57 = vmul.f32 %v3184_v28, %v3821_v40 }
 0x172   : > { %v2030_v9 = vadd.f32 %v3366_v63, %v1992_v56  ;;  %v2031_v8 = vadd.f32 %v3366_v63, %v1993_v21  ;;  %v982_v54 = vadd.f32 %v950_v6, %v880_v1  ;;  %v1003_v35 = vmul.f32 %v3184_v28, %v3827_v0  ;;  %v3847_v63 = vld [vmem:[#allocation2 + $0x109] sm:$0xff] }
 0x173   : > { %v964_v42 = vadd.f32 %v932_v22, %v862_v37  ;;  %v965_v5 = vadd.f32 %v933_v48, %v863_v24  ;;  %v1978_v4 = vmul.f32 %v1930_v62, %v1818_v55  ;;  %v1446_v44 = vmul.f32 %v3195_v41, %v3723_v53  ;;  %4521 = vst [vmem:[#allocation3_spill] sm:$0xff] %v3847_v63  ;;  %v3853_v24 = vld [vmem:[#allocation2 + $0x78] sm:$0xff]  ;;  %v3855_v55 = vld [vmem:[#allocation2 + $0x80] sm:$0xff] }
 0x174   : > { %v2062_v52 = vadd.f32 3.0, %v2030_v9  ;;  %v2063_v3 = vadd.f32 3.0, %v2031_v8  ;;  %v1376_v46 = vmul.f32 %v4483_v17, %v3699_v30  ;;  %v1750_v14 = vadd.f32 %v1718_v16, %v1648_v61 }
 0x175   : > { %v1034_v6 = vadd.f32 %v1002_v57, %v964_v42  ;;  %v1035_v56 = vadd.f32 %v1003_v35, %v965_v5  ;;  %v1358_v37 = vmul.f32 %v4483_v17, %v3587_v45  ;;  %v1428_v22 = vmul.f32 %v3195_v41, %v3752_v43  ;;  %v3869_v45 = vld [vmem:[#allocation2 + $0x79] sm:$0xff]  ;;  %v4522_v35 = vld [vmem:[#allocation7_spill] sm:$0xff] }
 0x176   : > { %v2094_v21 = vmax.f32 %v2062_v52, 0.0  ;;  %v2095_v1 = vmax.f32 %v2063_v3, 0.0  ;;  %v1052_v48 = vadd.f32 %v1020_v34, %v982_v54  ;;  %v1788_v62 = vmul.f32 %v3333_v25, %v3847_v63  ;;  %v4523_v34 = vld [vmem:[#allocation8_spill] sm:$0xff]  ;;  %v3875_v3 = vld [vmem:[#allocation2 + $0x81] sm:$0xff]  ;;  %v3883_v63 = vpop.permute.xlu0 %1933 }
 0x177   : > { %v1359_v30 = vmul.f32 %v4483_v17, %v3595_v59  ;;  %v1429_v61 = vmul.f32 %v3195_v41, %v3765_v15  ;;  %v1478_v42 = vadd.f32 %v1446_v44, %v1376_v46  ;;  %v1498_v5 = vmul.f32 %v3199_v49, %v3853_v24  ;;  %v3879_v44 = vld [vmem:[#allocation2 + $0x108] sm:$0xff]  ;;  %4524 = vst [vmem:[#allocation16_spill] sm:$0xff] %v3883_v63 }
 0x178   : > { %v2126_v16 = vmin.f32 %v2094_v21, 6.0  ;;  %v2127_v57 = vmin.f32 %v2095_v1, 6.0  ;;  %v1258_v52 = vmul.f32 %v4522_v35, %v1034_v6  ;;  %v1259_v54 = vmul.f32 %v4523_v34, %v1035_v56 }
 0x179   : > { %v1499_v25 = vmul.f32 %v3199_v49, %v3855_v55  ;;  %v1630_v59 = vmul.f32 %v3205_v11, %v3602_v20  ;;  %v1460_v46 = vadd.f32 %v1428_v22, %v1358_v37  ;;  %v1700_v7 = vmul.f32 %v3212_v47, %v3774_v32  ;;  %v3892_v20 = vld [vmem:[%s4421_s3 + $0x8] ss:$0 sm:$0xff] }
 0x17a   : > { %v2158_v21 = vmul.f32 %v2126_v16, %v2030_v9  ;;  %v2159_v1 = vmul.f32 %v2127_v57, %v2031_v8  ;;  %v1461_v6 = vadd.f32 %v1429_v61, %v1359_v30  ;;  %v1631_v56 = vmul.f32 %v3205_v11, %v4517_v19  ;;  %v1231_v61 = vpop.permute.xlu1 %1230 }
 0x17b   : > { %v1701_v35 = vmul.f32 %v3212_v47, %v3769_v29  ;;  %v1770_v9 = vmul.f32 %v3892_v20, %v3869_v45  ;;  %v1530_v37 = vadd.f32 %v1498_v5, %v1460_v46  ;;  %v1732_v22 = vadd.f32 %v1700_v7, %v1630_v59 }
 0x17c   : > { %v2186_v8 = vpack.c.bf16 %v2159_v1, %v2158_v21  ;;  %v1771_v30 = vmul.f32 %v3892_v20, %v3875_v3  ;;  %v1784_v19 = vmul.f32 %v3892_v20, %v3762_v12  ;;  %v1516_v16 = vmul.f32 %v3199_v49, %v3879_v44  ;;  %v3910_v1 = vld [vmem:[#allocation2 + $0x87] sm:$0xff] }
 0x17d   : > { %v1531_v57 = vadd.f32 %v1499_v25, %v1461_v6  ;;  %v1733_v34 = vadd.f32 %v1701_v35, %v1631_v56  ;;  %v1276_v63 = vmul.f32 %v1231_v61, %v1052_v48  ;;  %v1820_v31 = vadd.f32 %v1788_v62, %v1750_v14  ;;  %v4525_v6 = vld [vmem:[#allocation10_spill] sm:$0xff] }
 0x17e   : > { %2724 = vmatprep.mubr.msk.bf16.mxu1 %vm307_vm2, %v2186_v8  ;;  %v1562_v50 = vadd.f32 %v1530_v37, %v1258_v52  ;;  %v1802_v21 = vadd.f32 %v1770_v9, %v1732_v22  ;;  %v3905_v7 = vadd.f32 %v3815_v2, %v3812_v36  ;;  %v3908_v5 = vadd.f32 %v1784_v19, %v3825_v23  ;;  %v3916_v14 = vld [vmem:[#allocation2 + $0x8f] sm:$0xff]  ;;  %v1938_v36 = vpop.permute.xlu0 %1937 }
 0x17f   : > { %v1563_v12 = vadd.f32 %v1531_v57, %v1259_v54  ;;  %v1803_v59 = vadd.f32 %v1771_v30, %v1733_v34  ;;  %v3913_v25 = vadd.f32 %v1978_v4, %v3802_v51  ;;  %v1548_v46 = vadd.f32 %v1516_v16, %v1478_v42  ;;  %v4526_v2 = vld [vmem:[#allocation35_spill] sm:$0xff] }
 0x180   : > { %v1962_v48 = vmul.f32 %v4525_v6, %v1802_v21  ;;  %v864_v62 = vmul.f32 %v3149_v27, %v3717_v13  ;;  %v865_v23 = vmul.f32 %v3149_v27, %v3731_v10  ;;  %v934_v54 = vmul.f32 %v3155_v38, %v3821_v40  ;;  %v3934_v10 = vld [vmem:[%s4422_s4] ss:$0 sm:$0xff] }
 0x181   : > { %v1963_v52 = vmul.f32 %v4526_v2, %v1803_v59  ;;  %v935_v51 = vmul.f32 %v3155_v38, %v3827_v0  ;;  %v1580_v4 = vadd.f32 %v1548_v46, %v1276_v63  ;;  %v1980_v42 = vmul.f32 %v1938_v36, %v1820_v31  ;;  %v4527_v46 = vld [vmem:[#allocation11_spill] sm:$0xff]  ;;  %v4528_v2 = vld [vmem:[#allocation18_spill] sm:$0xff] }
 0x182   : > { %v1994_v56 = vadd.f32 %v1962_v48, %v1562_v50  ;;  %v1004_v35 = vmul.f32 %v3184_v28, %v3910_v1  ;;  %v966_v13 = vadd.f32 %v934_v54, %v864_v62  ;;  %v1005_v37 = vmul.f32 %v3184_v28, %v3916_v14  ;;  %v3939_v50 = vld [vmem:[#allocation2 + $0x88] sm:$0xff]  ;;  %v3955_v48 = vld [vmem:[#allocation2 + $0x90] sm:$0xff] }
 0x183   : > { %v1995_v9 = vadd.f32 %v1963_v52, %v1563_v12  ;;  %v967_v8 = vadd.f32 %v935_v51, %v865_v23  ;;  %v882_v31 = vmul.f32 %v3149_v27, %v3671_v33  ;;  %v1360_v63 = vmul.f32 %v4483_v17, %v3752_v43  ;;  %v3959_v62 = vld [vmem:[#allocation2 + $0x89] sm:$0xff]  ;;  %v3962_v23 = vld [vmem:[#allocation2 + $0x91] sm:$0xff] }
 0x184   : > { %v2032_v22 = vadd.f32 %v3934_v10, %v1994_v56  ;;  %v1430_v30 = vmul.f32 %v3195_v41, %v3853_v24  ;;  %v952_v61 = vmul.f32 %v3155_v38, %v3817_v26  ;;  %v1036_v16 = vadd.f32 %v1004_v35, %v966_v13 }
 0x185   : > { %v2033_v19 = vadd.f32 %v3934_v10, %v1995_v9  ;;  %v1037_v57 = vadd.f32 %v1005_v37, %v967_v8  ;;  %v1361_v21 = vmul.f32 %v4483_v17, %v3765_v15  ;;  %v1431_v33 = vmul.f32 %v3195_v41, %v3855_v55 }
 0x186   : > { %v2064_v34 = vadd.f32 3.0, %v2032_v22  ;;  %v1462_v12 = vadd.f32 %v1430_v30, %v1360_v63  ;;  %v1378_v43 = vmul.f32 %v4483_v17, %v3723_v53  ;;  %v1260_v6 = vmul.f32 %v4527_v46, %v1036_v16 }
 0x187   : > { %v2065_v59 = vadd.f32 3.0, %v2033_v19  ;;  %v1500_v26 = vmul.f32 %v3199_v49, %v3939_v50  ;;  %v1261_v15 = vmul.f32 %v4528_v2, %v1037_v57  ;;  %v1463_v52 = vadd.f32 %v1431_v33, %v1361_v21  ;;  %v847_v2 = vld [vmem:[#allocation2 + $0xff] sm:$0xff] }
 0x188   : > { %v2096_v36 = vmax.f32 %v2064_v34, 0.0  ;;  %v1632_v54 = vmul.f32 %v3205_v11, %v3774_v32  ;;  %v1633_v53 = vmul.f32 %v3205_v11, %v3769_v29  ;;  %v1702_v56 = vmul.f32 %v3212_v47, %v3869_v45  ;;  %v986_v32 = vld [vmem:[#allocation2 + $0x117] sm:$0xff] }
 0x189   : > { %v2097_v51 = vmax.f32 %v2065_v59, 0.0  ;;  %v1703_v35 = vmul.f32 %v3212_v47, %v3875_v3  ;;  %v1501_v13 = vmul.f32 %v3199_v49, %v3955_v48  ;;  %v1532_v8 = vadd.f32 %v1500_v26, %v1462_v12 }
 0x18a   : > { %v2128_v9 = vmin.f32 %v2096_v36, 6.0  ;;  %v1772_v37 = vmul.f32 %v3892_v20, %v3959_v62  ;;  %v1734_v30 = vadd.f32 %v1702_v56, %v1632_v54  ;;  %v1773_v29 = vmul.f32 %v3892_v20, %v3962_v23  ;;  %v1482_v36 = vld [vmem:[#allocation2 + $0x118] sm:$0xff] }
 0x18b   : > { %v2129_v63 = vmin.f32 %v2097_v51, 6.0  ;;  %v1735_v16 = vadd.f32 %v1703_v35, %v1633_v53  ;;  %v984_v57 = vadd.f32 %v952_v61, %v882_v31  ;;  %v1448_v34 = vmul.f32 %v3195_v41, %v3879_v44  ;;  %v3985_v31 = vld [vmem:[#allocation2 + $0x10f] sm:$0xff]  ;;  %v4530_v44 = vld [vmem:[#allocation37_spill] sm:$0xff] }
 0x18c   : > { %v1533_v21 = vadd.f32 %v1501_v13, %v1463_v52  ;;  %v1564_v33 = vadd.f32 %v1532_v8, %v1260_v6  ;;  %v2160_v59 = vmul.f32 %v2128_v9, %v2032_v22  ;;  %v1804_v12 = vadd.f32 %v1772_v37, %v1734_v30  ;;  %v4531_v6 = vld [vmem:[#allocation15_spill] sm:$0xff]  ;;  %v987_v37 = vld [vmem:[#allocation2 + $0x11f] sm:$0xff] }
 0x18d   : > { %v2161_v46 = vmul.f32 %v2129_v63, %v2033_v19  ;;  %v1805_v26 = vadd.f32 %v1773_v29, %v1735_v16  ;;  %v3982_v51 = vadd.f32 %v3934_v10, %v3913_v25  ;;  %v2012_v54 = vadd.f32 %v1980_v42, %v1580_v4  ;;  %v4532_v19 = vld [vmem:[#allocation33_spill] sm:$0xff] }
 0x18e   : > { %v1022_v53 = vmul.f32 %v3184_v28, %v986_v32  ;;  %v1565_v56 = vadd.f32 %v1533_v21, %v1261_v15  ;;  %v1964_v52 = vmul.f32 %v4530_v44, %v1804_v12  ;;  %v879_v35 = vmul.f32 %v3149_v27, %v4532_v19 }
 0x18f   : > { %4529 = vst [vmem:[#allocation32_spill] sm:$0xff] %v3982_v51  ;;  %v2187_v61 = vpack.c.bf16 %v2161_v46, %v2160_v59  ;;  %v1965_v22 = vmul.f32 %v4531_v6, %v1805_v26  ;;  %v1480_v13 = vadd.f32 %v1448_v34, %v1378_v43  ;;  %v1518_v8 = vmul.f32 %v3199_v49, %v1482_v36  ;;  %v4533_v43 = vld [vmem:[#allocation31_spill] sm:$0xff]  ;;  %v1241_v34 = vpop.permute.xlu1 %1240  ;;  %v4026_v46 = vld [vmem:[#allocation2 + $0x100] sm:$0xff] }
 0x190   : > { %v1054_v9 = vadd.f32 %v1022_v53, %v984_v57  ;;  %v883_v25 = vmul.f32 %v3149_v27, %v847_v2  ;;  %v1996_v4 = vadd.f32 %v1964_v52, %v1564_v33  ;;  %v953_v15 = vmul.f32 %v3155_v38, %v3985_v31  ;;  %v4028_v36 = vld [vmem:[#allocation2 + $0x97] sm:$0xff] }
 0x191   : > { %2725 = vmatmul.mubr.msk.bf16.gmra.mrb[8].mxu1 %vm307_vm2, %v2187_v61  ;;  %v1997_v42 = vadd.f32 %v1965_v22, %v1565_v56  ;;  %v1019_v63 = vmul.f32 %v3184_v28, %v847_v2  ;;  %v3999_v32 = vadd.f32 %v3727_v58, %v3743_v60  ;;  %v4003_v30 = vmul.f32 %v4533_v43, %v3905_v7  ;;  %v4535_v60 = vld [vmem:[#allocation14_spill] sm:$0xff]  ;;  %v4030_v56 = vld [vmem:[#allocation2 + $0x110] sm:$0xff]  ;;  %v4032_v61 = vld [vmem:[#allocation2 + $0x9f] sm:$0xff] }
 0x192   : > { %v4007_v16 = vmul.f32 %v3849_v39, %v3908_v5  ;;  %v4010_v29 = vadd.f32 3.0, %v3982_v51  ;;  %v4013_v57 = vadd.f32 %v3934_v10, %v2012_v54  ;;  %v2034_v21 = vadd.f32 %v3934_v10, %v1996_v4 }
 0x193   : > { %v2035_v58 = vadd.f32 %v3934_v10, %v1997_v42  ;;  %v981_v33 = vadd.f32 %v4535_v60, %v879_v35  ;;  %v4018_v59 = vmul.f32 %v1241_v34, %v1054_v9  ;;  %v4020_v7 = vadd.f32 %v1518_v8, %v1480_v13  ;;  %v4056_v60 = vld [vmem:[#allocation2 + $0xa0] sm:$0xff] }
 0x194   : > { %4534 = vst [vmem:[#allocation9_spill] sm:$0xff] %v4010_v29  ;;  %v4023_v39 = vmul.f32 %v3155_v38, %v847_v2  ;;  %v1023_v5 = vmul.f32 %v3184_v28, %v987_v37  ;;  %v2066_v12 = vadd.f32 3.0, %v2034_v21  ;;  %v985_v54 = vadd.f32 %v953_v15, %v883_v25  ;;  %v4050_v25 = vld [vmem:[#allocation2 + $0x98] sm:$0xff]  ;;  %v1483_v15 = vld [vmem:[#allocation2 + $0x120] sm:$0xff] }
 0x195   : > { %v2067_v26 = vadd.f32 3.0, %v2035_v58  ;;  %v1051_v53 = vadd.f32 %v1019_v63, %v981_v33  ;;  %v866_v44 = vmul.f32 %v3149_v27, %v3821_v40  ;;  %v867_v2 = vmul.f32 %v3149_v27, %v3827_v0 }
 0x196   : > { %v936_v52 = vmul.f32 %v3155_v38, %v3910_v1  ;;  %v937_v6 = vmul.f32 %v3155_v38, %v3916_v14  ;;  %v2098_v22 = vmax.f32 %v2066_v12, 0.0  ;;  %v1379_v35 = vmul.f32 %v4483_v17, %v4026_v46 }
 0x197   : > { %v2099_v19 = vmax.f32 %v2067_v26, 0.0  ;;  %v1006_v9 = vmul.f32 %v3184_v28, %v4028_v36  ;;  %v1449_v40 = vmul.f32 %v3195_v41, %v4030_v56  ;;  %v1007_v0 = vmul.f32 %v3184_v28, %v4032_v61 }
 0x198   : > { %v968_v13 = vadd.f32 %v936_v52, %v866_v44  ;;  %v969_v8 = vadd.f32 %v937_v6, %v867_v2  ;;  %v2130_v4 = vmin.f32 %v2098_v22, 6.0  ;;  %v1362_v37 = vmul.f32 %v4483_v17, %v3853_v24  ;;  %v4536_v6 = vld [vmem:[#allocation12_spill] sm:$0xff] }
 0x199   : > { %v2131_v42 = vmin.f32 %v2099_v19, 6.0  ;;  %v1363_v63 = vmul.f32 %v4483_v17, %v3855_v55  ;;  %v1432_v33 = vmul.f32 %v3195_v41, %v3939_v50  ;;  %v1433_v12 = vmul.f32 %v3195_v41, %v3955_v48  ;;  %v4537_v19 = vld [vmem:[#allocation13_spill] sm:$0xff] }
 0x19a   : > { %v1038_v43 = vadd.f32 %v1006_v9, %v968_v13  ;;  %v1039_v34 = vadd.f32 %v1007_v0, %v969_v8  ;;  %v2162_v26 = vmul.f32 %v2130_v4, %v2034_v21  ;;  %v1515_v2 = vmul.f32 %v3199_v49, %v4026_v46  ;;  %v4069_v13 = vld [vmem:[#allocation2 + $0x99] sm:$0xff]  ;;  %v4071_v8 = vld [vmem:[#allocation2 + $0xa1] sm:$0xff] }
 0x19b   : > { %v2163_v44 = vmul.f32 %v2131_v42, %v2035_v58  ;;  %v1502_v24 = vmul.f32 %v3199_v49, %v4050_v25  ;;  %v1055_v52 = vadd.f32 %v1023_v5, %v985_v54  ;;  %v1519_v55 = vmul.f32 %v3199_v49, %v1483_v15 }
 0x19c   : > { %v1262_v22 = vmul.f32 %v4536_v6, %v1038_v43  ;;  %v1263_v9 = vmul.f32 %v4537_v19, %v1039_v34  ;;  %v1464_v21 = vadd.f32 %v1432_v33, %v1362_v37  ;;  %v1503_v58 = vmul.f32 %v3199_v49, %v4056_v60  ;;  %v1685_v33 = vld [vmem:[#allocation2 + $0x111] sm:$0xff] }
 0x19d   : > { %v2188_v0 = vpack.c.bf16 %v2163_v44, %v2162_v26  ;;  %v1634_v4 = vmul.f32 %v3205_v11, %v3869_v45  ;;  %v1465_v42 = vadd.f32 %v1433_v12, %v1363_v63  ;;  %v1635_v5 = vmul.f32 %v3205_v11, %v3875_v3  ;;  %v1615_v63 = vld [vmem:[#allocation2 + $0x101] sm:$0xff]  ;;  %v4538_v44 = vld [vmem:[#allocation36_spill] sm:$0xff] }
 0x19e   : > { %v1704_v54 = vmul.f32 %v3212_v47, %v3959_v62  ;;  %v1705_v15 = vmul.f32 %v3212_v47, %v3962_v23  ;;  %v1481_v43 = vadd.f32 %v1449_v40, %v1379_v35  ;;  %v1534_v37 = vadd.f32 %v1502_v24, %v1464_v21  ;;  %v4539_v40 = vld [vmem:[#allocation40_spill] sm:$0xff]  ;;  %v1246_v21 = vpop.permute.xlu1 %1245 }
 0x19f   : > { %2728 = vmatprep.mubr.msk.bf16.mxu1 %vm307_vm2, %v2188_v0  ;;  %v1774_v34 = vmul.f32 %v3892_v20, %v4069_v13  ;;  %v1775_v45 = vmul.f32 %v3892_v20, %v4071_v8  ;;  %v1535_v12 = vadd.f32 %v1503_v58, %v1465_v42  ;;  %v881_v6 = vmul.f32 %v3149_v27, %v4538_v44 }
 0x1a0   : > { %v1736_v3 = vadd.f32 %v1704_v54, %v1634_v4  ;;  %v1737_v26 = vadd.f32 %v1705_v15, %v1635_v5  ;;  %v4092_v19 = vadd.f32 %v4020_v7, %v4018_v59  ;;  %v1021_v35 = vmul.f32 %v3184_v28, %v3985_v31  ;;  %v4541_v54 = vld [vmem:[#allocation43_spill] sm:$0xff] }
 0x1a1   : > { %v4097_v24 = vmul.f32 %v4539_v40, %v1051_v53  ;;  %v1566_v0 = vadd.f32 %v1534_v37, %v1262_v22  ;;  %v1567_v51 = vadd.f32 %v1535_v12, %v1263_v9  ;;  %v983_v4 = vadd.f32 %v4023_v39, %v881_v6  ;;  %v4540_v22 = vld [vmem:[#allocation17_spill] sm:$0xff] }
 0x1a2   : > { %v1806_v29 = vadd.f32 %v1774_v34, %v1736_v3  ;;  %v1807_v58 = vadd.f32 %v1775_v45, %v1737_v26  ;;  %v4100_v42 = vmul.f32 %v1246_v21, %v1055_v52  ;;  %v4103_v5 = vadd.f32 %v1515_v2, %v3657_v18  ;;  %v4114_v37 = vld [vmem:[#allocation2 + $0xa7] sm:$0xff]  ;;  %v4543_v34 = vld [vmem:[#allocation39_spill] sm:$0xff] }
 0x1a3   : > { %v1651_v59 = vmul.f32 %v3205_v11, %v1615_v63  ;;  %v1721_v7 = vmul.f32 %v3212_v47, %v1685_v33  ;;  %v4107_v31 = vadd.f32 %v1519_v55, %v1481_v43  ;;  %v4110_v53 = vmul.f32 %v3892_v20, %v1615_v63  ;;  %v1755_v39 = vld [vmem:[#allocation2 + $0x121] sm:$0xff] }
 0x1a4   : > { %v1966_v9 = vmul.f32 %v4540_v22, %v1806_v29  ;;  %v1967_v15 = vmul.f32 %v4541_v54, %v1807_v58  ;;  %v4542_v52 = vld [vmem:[#allocation38_spill] sm:$0xff]  ;;  %v1447_v2 = vmul.f32 %v3195_v41, %v4026_v46  ;;  %v1649_v55 = vmul.f32 %v3205_v11, %v4543_v34 }
 0x1a5   : > { %v1377_v18 = vmul.f32 %v4483_v17, %v4542_v52  ;;  %v1719_v43 = vmul.f32 %v3212_v47, %v1615_v63  ;;  %v1053_v3 = vadd.f32 %v1021_v35, %v983_v4  ;;  %v868_v29 = vmul.f32 %v3149_v27, %v3910_v1  ;;  %v4544_v54 = vld [vmem:[#allocation26_spill] sm:$0xff] }
 0x1a6   : > { %v1998_v45 = vadd.f32 %v1966_v9, %v1566_v0  ;;  %v1999_v12 = vadd.f32 %v1967_v15, %v1567_v51  ;;  %v869_v26 = vmul.f32 %v3149_v27, %v3916_v14  ;;  %v938_v44 = vmul.f32 %v3155_v38, %v4028_v36  ;;  %v2814_v52 = vld [vmem:[#allocation2 + $0xaf] sm:$0xff] }
 0x1a7   : > { %v939_v46 = vmul.f32 %v3155_v38, %v4032_v61  ;;  %v1008_v6 = vmul.f32 %v3184_v28, %v4114_v37  ;;  %v1791_v63 = vmul.f32 %v3892_v20, %v1755_v39  ;;  %v1517_v1 = vmul.f32 %v3199_v49, %v4030_v56 }
 0x1a8   : > { %v2036_v51 = vadd.f32 %v3934_v10, %v1998_v45  ;;  %v2037_v35 = vadd.f32 %v3934_v10, %v1999_v12  ;;  %v1479_v40 = vadd.f32 %v1447_v2, %v1377_v18  ;;  %v1751_v14 = vadd.f32 %v1719_v43, %v1649_v55  ;;  %v4145_v18 = vld [vmem:[#allocation2 + $0xa8] sm:$0xff] }
 0x1a9   : > { %v970_v0 = vadd.f32 %v938_v44, %v868_v29  ;;  %v971_v21 = vadd.f32 %v939_v46, %v869_v26  ;;  %v1364_v22 = vmul.f32 %v4483_v17, %v3939_v50  ;;  %v1434_v9 = vmul.f32 %v3195_v41, %v4050_v25 }
 0x1aa   : > { %v2068_v58 = vadd.f32 3.0, %v2036_v51  ;;  %v2069_v4 = vadd.f32 3.0, %v2037_v35  ;;  %v1277_v15 = vmul.f32 %v4544_v54, %v1053_v3  ;;  %v1789_v39 = vmul.f32 %v3892_v20, %v1685_v33 }
 0x1ab   : > { %v1009_v34 = vmul.f32 %v2814_v52, %v3184_v28  ;;  %v1040_v56 = vadd.f32 %v1008_v6, %v970_v0  ;;  %v1435_v43 = vmul.f32 %v3195_v41, %v4056_v60  ;;  %v1466_v45 = vadd.f32 %v1434_v9, %v1364_v22  ;;  %v4153_v6 = vld [vmem:[#allocation2 + $0xa9] sm:$0xff] }
 0x1ac   : > { %v2100_v2 = vmax.f32 %v2068_v58, 0.0  ;;  %v2101_v55 = vmax.f32 %v2069_v4, 0.0  ;;  %v1753_v50 = vadd.f32 %v1721_v7, %v1651_v59  ;;  %v1549_v12 = vadd.f32 %v1517_v1, %v1479_v40  ;;  %v4545_v58 = vld [vmem:[#allocation19_spill] sm:$0xff] }
 0x1ad   : > { %v1821_v29 = vadd.f32 %v1789_v39, %v1751_v14  ;;  %v1365_v3 = vmul.f32 %v4483_v17, %v3955_v48  ;;  %v1041_v44 = vadd.f32 %v1009_v34, %v971_v21  ;;  %v1504_v46 = vmul.f32 %v3199_v49, %v4145_v18  ;;  %v1942_v14 = vpop.permute.xlu1 %1941  ;;  %v4546_v34 = vld [vmem:[#allocation20_spill] sm:$0xff] }
 0x1ae   : > { %v2132_v26 = vmin.f32 %v2100_v2, 6.0  ;;  %v2133_v33 = vmin.f32 %v2101_v55, 6.0  ;;  %v1581_v0 = vadd.f32 %v1549_v12, %v1277_v15  ;;  %v1264_v4 = vmul.f32 %v4545_v58, %v1040_v56  ;;  %v4547_v2 = vld [vmem:[#allocation45_spill] sm:$0xff]  ;;  %v4548_v58 = vld [vmem:[#allocation24_spill] sm:$0xff] }
 0x1af   : > { %v1636_v22 = vmul.f32 %v3205_v11, %v3959_v62  ;;  %v1706_v59 = vmul.f32 %v3212_v47, %v4069_v13  ;;  %v1467_v48 = vadd.f32 %v1435_v43, %v1365_v3  ;;  %v1536_v40 = vadd.f32 %v1504_v46, %v1466_v45 }
 0x1b0   : > { %v2164_v7 = vmul.f32 %v2132_v26, %v2036_v51  ;;  %v2165_v1 = vmul.f32 %v2133_v33, %v2037_v35  ;;  %v1637_v21 = vmul.f32 %v3205_v11, %v3962_v23  ;;  %v1707_v9 = vmul.f32 %v3212_v47, %v4071_v8  ;;  %v2815_v35 = vld [vmem:[#allocation2 + $0xb0] sm:$0xff] }
 0x1b1   : > { %v1738_v54 = vadd.f32 %v1706_v59, %v1636_v22  ;;  %v1776_v15 = vmul.f32 %v3892_v20, %v4153_v6  ;;  %v1981_v62 = vmul.f32 %v1942_v14, %v1821_v29  ;;  %v1265_v56 = vmul.f32 %v4546_v34, %v1041_v44 }
 0x1b2   : > { %v2189_v39 = vpack.c.bf16 %v2165_v1, %v2164_v7  ;;  %v1777_v51 = vmul.f32 %v3892_v20, %v4547_v2  ;;  %v1505_v55 = vmul.f32 %v2815_v35, %v3199_v49  ;;  %v1568_v43 = vadd.f32 %v1536_v40, %v1264_v4  ;;  %v2816_v7 = vld [vmem:[#allocation2 + $0xbf] sm:$0xff]  ;;  %v4551_v2 = vld [vmem:[#allocation51_spill] sm:$0xff] }
 0x1b3   : > { %v1739_v45 = vadd.f32 %v1707_v9, %v1637_v21  ;;  %v1808_v23 = vadd.f32 %v1776_v15, %v1738_v54  ;;  %v1823_v12 = vadd.f32 %v1791_v63, %v1753_v50  ;;  %v870_v3 = vmul.f32 %v3149_v27, %v4028_v36  ;;  %v4549_v63 = vld [vmem:[#allocation47_spill] sm:$0xff]  ;;  %v4550_v40 = vld [vmem:[#allocation25_spill] sm:$0xff]  ;;  %v1950_v54 = vpop.permute.xlu0 %1949 }
 0x1b4   : > { %2729 = vmatmul.mubr.msk.bf16.gmra.mrb[12].mxu1 %vm307_vm2, %v2189_v39  ;;  %v871_v29 = vmul.f32 %v3149_v27, %v4032_v61  ;;  %v940_v26 = vmul.f32 %v3155_v38, %v4114_v37  ;;  %v2013_v33 = vadd.f32 %v1981_v62, %v1581_v0  ;;  %v1537_v44 = vadd.f32 %v1505_v55, %v1467_v48 }
 0x1b5   : > { %v1809_v46 = vadd.f32 %v1777_v51, %v1739_v45  ;;  %v1968_v22 = vmul.f32 %v4548_v58, %v1808_v23  ;;  %v941_v4 = vmul.f32 %v2814_v52, %v3155_v38  ;;  %v1010_v50 = vmul.f32 %v3184_v28, %v4549_v63  ;;  %v4553_v23 = vld [vmem:[#allocation3_spill] sm:$0xff]  ;;  %v1754_v58 = vld [vmem:[#allocation2 + $0x119] sm:$0xff] }
 0x1b6   : > { %v972_v59 = vadd.f32 %v940_v26, %v870_v3  ;;  %v1011_v36 = vmul.f32 %v2816_v7, %v3184_v28  ;;  %v4184_v61 = vadd.f32 %v4107_v31, %v4100_v42  ;;  %v1569_v1 = vadd.f32 %v1537_v44, %v1265_v56  ;;  %v4554_v3 = vld [vmem:[#allocation21_spill] sm:$0xff] }
 0x1b7   : > { %v1969_v0 = vmul.f32 %v4550_v40, %v1809_v46  ;;  %v2000_v48 = vadd.f32 %v1968_v22, %v1568_v43  ;;  %v973_v14 = vadd.f32 %v941_v4, %v871_v29  ;;  %v1366_v52 = vmul.f32 %v4483_v17, %v4050_v25  ;;  %v4552_v43 = vld [vmem:[#allocation59_spill] sm:$0xff]  ;;  %v2817_v29 = vld [vmem:[#allocation2 + $0xc0] sm:$0xff] }
 0x1b8   : > { %v1042_v21 = vadd.f32 %v1010_v50, %v972_v59  ;;  %v1436_v9 = vmul.f32 %v3195_v41, %v4145_v18  ;;  %v1367_v42 = vmul.f32 %v4483_v17, %v4056_v60  ;;  %v1437_v31 = vmul.f32 %v2815_v35, %v3195_v41  ;;  %v4555_v22 = vld [vmem:[#allocation23_spill] sm:$0xff] }
 0x1b9   : > { %v2001_v15 = vadd.f32 %v1969_v0, %v1569_v1  ;;  %v2038_v39 = vadd.f32 %v3934_v10, %v2000_v48  ;;  %v4195_v62 = vmul.f32 %v1950_v54, %v1823_v12  ;;  %v4198_v34 = vadd.f32 %v3934_v10, %v2013_v33  ;;  %v2818_v1 = vld [vmem:[#allocation2 + $0xb1] sm:$0xff] }
 0x1ba   : > { %v1043_v56 = vadd.f32 %v1011_v36, %v973_v14  ;;  %v1506_v25 = vmul.f32 %v3199_v49, %v4551_v2  ;;  %v1650_v45 = vmul.f32 %v3205_v11, %v4552_v43  ;;  %v1720_v60 = vmul.f32 %v3212_v47, %v4553_v23 }
 0x1bb   : > { %v2039_v51 = vadd.f32 %v3934_v10, %v2001_v15  ;;  %v2070_v55 = vadd.f32 3.0, %v2038_v39  ;;  %v1266_v35 = vmul.f32 %v4554_v3, %v1042_v21  ;;  %v1468_v12 = vadd.f32 %v1436_v9, %v1366_v52  ;;  %v2819_v15 = vld [vmem:[#allocation2 + $0xc1] sm:$0xff] }
 0x1bc   : > { %v1507_v26 = vmul.f32 %v2817_v29, %v3199_v49  ;;  %v1638_v33 = vmul.f32 %v3205_v11, %v4069_v13  ;;  %v1267_v4 = vmul.f32 %v4555_v22, %v1043_v56  ;;  %v1469_v59 = vadd.f32 %v1437_v31, %v1367_v42  ;;  %v4556_v13 = vld [vmem:[#allocation57_spill] sm:$0xff] }
 0x1bd   : > { %v2071_v44 = vadd.f32 3.0, %v2039_v51  ;;  %v2102_v46 = vmax.f32 %v2070_v55, 0.0  ;;  %v1538_v50 = vadd.f32 %v1506_v25, %v1468_v12  ;;  %v1639_v7 = vmul.f32 %v3205_v11, %v4071_v8  ;;  %v2820_v3 = vld [vmem:[#allocation2 + $0xc7] sm:$0xff] }
 0x1be   : > { %v1708_v36 = vmul.f32 %v3212_v47, %v4153_v6  ;;  %v1709_v40 = vmul.f32 %v2818_v1, %v3212_v47  ;;  %v1539_v14 = vadd.f32 %v1507_v26, %v1469_v59  ;;  %v1778_v21 = vmul.f32 %v3892_v20, %v4556_v13 }
 0x1bf   : > { %v2103_v0 = vmax.f32 %v2071_v44, 0.0  ;;  %v2134_v48 = vmin.f32 %v2102_v46, 6.0  ;;  %v1790_v52 = vmul.f32 %v3892_v20, %v1754_v58  ;;  %v1779_v42 = vmul.f32 %v2819_v15, %v3892_v20  ;;  %v4558_v44 = vld [vmem:[#allocation22_spill] sm:$0xff]  ;;  %v4559_v58 = vld [vmem:[#allocation27_spill] sm:$0xff] }
 0x1c0   : > { %v1740_v9 = vadd.f32 %v1708_v36, %v1638_v33  ;;  %v1741_v54 = vadd.f32 %v1709_v40, %v1639_v7  ;;  %v1570_v31 = vadd.f32 %v1538_v50, %v1266_v35  ;;  %v1571_v56 = vadd.f32 %v1539_v14, %v1267_v4  ;;  %v4557_v33 = vld [vmem:[#allocation41_spill] sm:$0xff]  ;;  %v4560_v4 = vld [vmem:[#allocation44_spill] sm:$0xff]  ;;  %v4566_v15 = vld [vmem:[#allocation55_spill] sm:$0xff] }
 0x1c1   : > { %v2135_v8 = vmin.f32 %v2103_v0, 6.0  ;;  %v872_v25 = vmul.f32 %v3149_v27, %v4114_v37  ;;  %v942_v23 = vmul.f32 %v3155_v38, %v4549_v63  ;;  %v1012_v12 = vmul.f32 %v2820_v3, %v3184_v28  ;;  %v4561_v50 = vld [vmem:[#allocation52_spill] sm:$0xff]  ;;  %v4572_v3 = vld [vmem:[#allocation58_spill] sm:$0xff] }
 0x1c2   : > { %v1810_v55 = vadd.f32 %v1778_v21, %v1740_v9  ;;  %v1811_v43 = vadd.f32 %v1779_v42, %v1741_v54  ;;  %v2166_v29 = vmul.f32 %v2134_v48, %v2038_v39  ;;  %v1269_v46 = vmul.f32 %v4558_v44, %v4557_v33  ;;  %v4562_v39 = vld [vmem:[#allocation5_spill] sm:$0xff]  ;;  %v4565_v48 = vld [vmem:[#allocation28_spill] sm:$0xff]  ;;  %v4568_v42 = vld [vmem:[#allocation42_spill] sm:$0xff] }
 0x1c3   : > { %v2167_v26 = vmul.f32 %v2135_v8, %v2039_v51  ;;  %v1368_v35 = vmul.f32 %v4483_v17, %v4145_v18  ;;  %v974_v37 = vadd.f32 %v942_v23, %v872_v25  ;;  %v1438_v59 = vmul.f32 %v3195_v41, %v4551_v2  ;;  %v4563_v41 = vld [vmem:[#allocation6_spill] sm:$0xff] }
 0x1c4   : > { %v1970_v22 = vmul.f32 %v4559_v58, %v1810_v55  ;;  %v1971_v27 = vmul.f32 %v4560_v4, %v1811_v43  ;;  %v1752_v63 = vadd.f32 %v1720_v60, %v1650_v45  ;;  %v1508_v28 = vmul.f32 %v3199_v49, %v4561_v50  ;;  %v4564_v45 = vld [vmem:[#allocation50_spill] sm:$0xff] }
 0x1c5   : > { %v2190_v38 = vpack.c.bf16 %v2167_v26, %v2166_v29  ;;  %v1573_v51 = vadd.f32 %v4562_v39, %v1269_v46  ;;  %v1044_v1 = vadd.f32 %v1012_v12, %v974_v37  ;;  %v1470_v40 = vadd.f32 %v1438_v59, %v1368_v35  ;;  %v4571_v25 = vld [vmem:[#allocation34_spill] sm:$0xff]  ;;  %v4573_v29 = vld [vmem:[#allocation48_spill] sm:$0xff]  ;;  %v4576_v39 = vld [vmem:[#allocation49_spill] sm:$0xff] }
 0x1c6   : > { %v2002_v7 = vadd.f32 %v1970_v22, %v1570_v31  ;;  %v2003_v36 = vadd.f32 %v1971_v27, %v1571_v56  ;;  %v1640_v17 = vmul.f32 %v3205_v11, %v4153_v6  ;;  %v1710_v18 = vmul.f32 %v3212_v47, %v4556_v13  ;;  %v4567_v11 = vld [vmem:[#allocation29_spill] sm:$0xff]  ;;  %v4569_v47 = vld [vmem:[#allocation30_spill] sm:$0xff]  ;;  %v4570_v56 = vld [vmem:[#allocation56_spill] sm:$0xff] }
 0x1c7   : > { %2732 = vmatprep.mubr.msk.bf16.mxu1 %vm307_vm2, %v2190_v38  ;;  %v1780_v2 = vmul.f32 %v3892_v20, %v4563_v41  ;;  %v2005_v60 = vadd.f32 %v4564_v45, %v1573_v51  ;;  %v1268_v14 = vmul.f32 %v4565_v48, %v1044_v1  ;;  %v1540_v21 = vadd.f32 %v1508_v28, %v1470_v40  ;;  %v4574_v58 = vld [vmem:[#allocation46_spill] sm:$0xff]  ;;  %v4575_v27 = vld [vmem:[#allocation53_spill] sm:$0xff] }
 0x1c8   : > { %v2040_v49 = vadd.f32 %v3934_v10, %v2002_v7  ;;  %v2041_v0 = vadd.f32 %v3934_v10, %v2003_v36  ;;  %v1742_v9 = vadd.f32 %v1710_v18, %v1640_v17  ;;  %v1270_v6 = vmul.f32 %v4567_v11, %v4566_v15  ;;  %v4577_v17 = vld [vmem:[#allocation16_spill] sm:$0xff] }
 0x1c9   : > { %v2043_v54 = vadd.f32 %v3934_v10, %v2005_v60  ;;  %v1271_v13 = vmul.f32 %v4569_v47, %v4568_v42  ;;  %v1572_v31 = vadd.f32 %v1540_v21, %v1268_v14  ;;  %v1272_v55 = vmul.f32 %v4571_v25, %v4570_v56  ;;  %v4580_v56 = vld [vmem:[#allocation9_spill] sm:$0xff] }
 0x1ca   : > { %v2072_v8 = vadd.f32 3.0, %v2040_v49  ;;  %v2073_v20 = vadd.f32 3.0, %v2041_v0  ;;  %v1812_v43 = vadd.f32 %v1780_v2, %v1742_v9  ;;  %v1574_v12 = vadd.f32 %v4572_v3, %v1270_v6 }
 0x1cb   : > { %v2075_v23 = vadd.f32 3.0, %v2043_v54  ;;  %v1575_v26 = vadd.f32 %v4573_v29, %v1271_v13  ;;  %v1822_v33 = vadd.f32 %v1790_v52, %v1752_v63  ;;  %v1576_v35 = vadd.f32 %v3999_v32, %v1272_v55  ;;  %v1946_v63 = vpop.permute.xlu1 %1945 }
 0x1cc   : > { %v2104_v44 = vmax.f32 %v2072_v8, 0.0  ;;  %v2105_v46 = vmax.f32 %v2073_v20, 0.0  ;;  %v1972_v22 = vmul.f32 %v4574_v58, %v1812_v43  ;;  %v2006_v4 = vadd.f32 %v4003_v30, %v1574_v12  ;;  %v4578_v8 = vld [vmem:[#allocation4_spill] sm:$0xff]  ;;  %v4579_v20 = vld [vmem:[#allocation54_spill] sm:$0xff] }
 0x1cd   : > { %v2007_v37 = vadd.f32 %v4575_v27, %v1575_v26  ;;  %v1579_v59 = vadd.f32 %v4103_v5, %v4097_v24  ;;  %v2008_v28 = vadd.f32 %v4007_v16, %v1576_v35  ;;  %v1819_v52 = vadd.f32 %v4110_v53, %v4576_v39 }
 0x1ce   : > { %v2136_v38 = vmin.f32 %v2104_v44, 6.0  ;;  %v2137_v50 = vmin.f32 %v2105_v46, 6.0  ;;  %v2004_v51 = vadd.f32 %v1972_v22, %v1572_v31  ;;  %v2107_v7 = vmax.f32 %v2075_v23, 0.0 }
 0x1cf   : > { %v2044_v32 = vadd.f32 %v3934_v10, %v2006_v4  ;;  %v2045_v36 = vadd.f32 %v3934_v10, %v2007_v37  ;;  %v2046_v40 = vadd.f32 %v3934_v10, %v2008_v28  ;;  %v1979_v24 = vmul.f32 %v4577_v17, %v1819_v52  ;;  %v4581_v28 = vld [vmem:[#allocation32_spill] sm:$0xff]  ;;  %v4295_v17 = vld [vmem:[%s4424_s6] ss:$0 sm:$0xff] }
 0x1d0   : > { %v2168_v30 = vmul.f32 %v2136_v38, %v2040_v49  ;;  %v2169_v1 = vmul.f32 %v2137_v50, %v2041_v0  ;;  %v2083_v5 = vadd.f32 3.0, %v4198_v34  ;;  %v2042_v16 = vadd.f32 %v3934_v10, %v2004_v51 }
 0x1d1   : > { %v2076_v18 = vadd.f32 3.0, %v2044_v32  ;;  %v2077_v41 = vadd.f32 3.0, %v2045_v36  ;;  %v1982_v53 = vmul.f32 %v1946_v63, %v1822_v33  ;;  %v2078_v45 = vadd.f32 3.0, %v2046_v40 }
 0x1d2   : > { %v2191_v2 = vpack.c.bf16 %v2169_v1, %v2168_v30  ;;  %v2011_v60 = vadd.f32 %v1979_v24, %v1579_v59  ;;  %v2074_v48 = vadd.f32 3.0, %v2042_v16  ;;  %v2139_v14 = vmin.f32 %v2107_v7, 6.0 }
 0x1d3   : > { %v2108_v21 = vmax.f32 %v2076_v18, 0.0  ;;  %v2109_v9 = vmax.f32 %v2077_v41, 0.0  ;;  %v2015_v49 = vadd.f32 %v4195_v62, %v4184_v61  ;;  %v2014_v0 = vadd.f32 %v1982_v53, %v4092_v19 }
 0x1d4   : > { %2733 = vmatmul.mubr.msk.bf16.gmra.mrb[16].mxu1 %vm307_vm2, %v2191_v2  ;;  %v2110_v15 = vmax.f32 %v2078_v45, 0.0  ;;  %v2049_v11 = vadd.f32 %v3934_v10, %v2011_v60  ;;  %v2082_v6 = vadd.f32 3.0, %v4013_v57  ;;  %v2106_v42 = vmax.f32 %v2074_v48, 0.0 }
 0x1d5   : > { %v2140_v47 = vmin.f32 %v2108_v21, 6.0  ;;  %v2141_v13 = vmin.f32 %v2109_v9, 6.0  ;;  %v2175_v31 = vmul.f32 %v4579_v20, %v4578_v8  ;;  %v2112_v25 = vmax.f32 %v4580_v56, 0.0 }
 0x1d6   : > { %v2142_v55 = vmin.f32 %v2110_v15, 6.0  ;;  %v2081_v43 = vadd.f32 3.0, %v2049_v11  ;;  %v2115_v61 = vmax.f32 %v2083_v5, 0.0  ;;  %v2138_v62 = vmin.f32 %v2106_v42, 6.0  ;;  %v2822_v5 = vld [vmem:[%s2923_s18] sm:$0xff]  }
 0x1d7   : > { %v2171_v19 = vmul.f32 %v2139_v14, %v2043_v54  ;;  %v2173_v23 = vmul.f32 %v2141_v13, %v2045_v36  ;;  %v2053_v3 = vadd.f32 %v3934_v10, %v2015_v49  ;;  %v2052_v12 = vadd.f32 %v3934_v10, %v2014_v0  ;;  %v2824_v13 = vld [vmem:[%s2923_s18 + $0x10] sm:$0xff]  }
 0x1d8   : > { %v2172_v29 = vmul.f32 %v2140_v47, %v2044_v32  ;;  %v2113_v26 = vmax.f32 %v2081_v43, 0.0  ;;  %v2114_v33 = vmax.f32 %v2082_v6, 0.0  ;;  %v2170_v44 = vmul.f32 %v2138_v62, %v2042_v16  ;;  %v2823_v6 = vld [vmem:[%s2923_s18 + $0x18] sm:$0xff]  }
 0x1d9   : > { %v2174_v46 = vmul.f32 %v2142_v55, %v2046_v40  ;;  %v2147_v22 = vmin.f32 %v2115_v61, 6.0  ;;  %v2144_v37 = vmin.f32 %v2112_v25, 6.0  ;;  %v2085_v59 = vadd.f32 3.0, %v2053_v3 }
 0x1da   : > { %v2193_v35 = vpack.c.bf16 %v2173_v23, %v2172_v29  ;;  %v2145_v58 = vmin.f32 %v2113_v26, 6.0  ;;  %v2192_v4 = vpack.c.bf16 %v2171_v19, %v2170_v44  ;;  %v2084_v38 = vadd.f32 3.0, %v2052_v12  ;;  %v2825_v26 = vld [vmem:[%s2923_s18 + $0x28] sm:$0xff]  }
 0x1db   : > { %v2194_v27 = vpack.c.bf16 %v2175_v31, %v2174_v46  ;;  %v2146_v50 = vmin.f32 %v2114_v33, 6.0  ;;  %v2179_v10 = vmul.f32 %v2147_v22, %v4198_v34  ;;  %v2176_v39 = vmul.f32 %v2144_v37, %v4581_v28  ;;  %v2826_v46 = vld [vmem:[%s2923_s18 + $0x20] sm:$0xff]  }
 0x1dc   : > { %2736 = vmatprep.mubr.msk.bf16.mxu1 %vm307_vm2, %v2192_v4  ;;  %v2177_v54 = vmul.f32 %v2145_v58, %v2049_v11  ;;  %v2117_v52 = vmax.f32 %v2085_v59, 0.0  ;;  %v2116_v63 = vmax.f32 %v2084_v38, 0.0  ;;  %v2425_v16 = vunpack.c.l.bf16 %v2822_v5 }
 0x1dd   : > { %2737 = vmatmul.mubr.msk.bf16.gmra.mrb[20].mxu1 %vm307_vm2, %v2193_v35  ;;  %v2178_v51 = vmul.f32 %v2146_v50, %v4013_v57  ;;  %v2821_v57 = vld [vmem:[%s2923_s18 + $0x8] sm:$0xff]   ;;  %v2426_v45 = vunpack.c.h.bf16 %v2822_v5  ;;  %v2431_v42 = vunpack.c.l.bf16 %v2823_v6  ;;  %v2429_v8 = vunpack.c.l.bf16 %v2824_v13 }
 0x1de   : > { %2740 = vmatprep.mubr.msk.bf16.mxu1 %vm307_vm2, %v2194_v27  ;;  %v2195_v7 = vpack.c.bf16 %v2177_v54, %v2176_v39  ;;  %v2149_v36 = vmin.f32 %v2117_v52, 6.0  ;;  %v2148_v30 = vmin.f32 %v2116_v63, 6.0  ;;  %v2427_v24 = vunpack.c.l.bf16 %v2821_v57  ;;  %v2827_v63 = vld [vmem:[%s2923_s18 + $0x38] sm:$0xff]  }
 0x1df   : > { %v2196_v32 = vpack.c.bf16 %v2179_v10, %v2178_v51  ;;  %v2428_v2 = vunpack.c.h.bf16 %v2821_v57  ;;  %v2432_v56 = vunpack.c.h.bf16 %v2823_v6  ;;  %v2430_v43 = vunpack.c.h.bf16 %v2824_v13 }
 0x1e0   : > { %v2181_v34 = vmul.f32 %v2149_v36, %v2053_v3  ;;  %v2180_v1 = vmul.f32 %v2148_v30, %v2052_v12  ;;  %v2435_v33 = vunpack.c.l.bf16 %v2825_v26  ;;  %v2433_v35 = vunpack.c.l.bf16 %v2826_v46 }
 0x1e1   : > { %v2436_v4 = vunpack.c.h.bf16 %v2825_v26  ;;  %v2434_v59 = vunpack.c.h.bf16 %v2826_v46  ;;  %v2439_v51 = vunpack.c.l.bf16 %v2827_v63 }
 0x1e2   : > { %v2197_v40 = vpack.c.bf16 %v2181_v34, %v2180_v1  ;;  %v2440_v1 = vunpack.c.h.bf16 %v2827_v63 }
 0x1e5   : > { %2741 = vmatmul.mubr.msk.bf16.gmra.mrb[24].mxu1 %vm307_vm2, %v2195_v7 }
 0x1e6   : > { %2744 = vmatprep.mubr.msk.bf16.mxu1 %vm307_vm2, %v2196_v32  ;;  %v2828_v32 = vld [vmem:[%s2923_s18 + $0x30] sm:$0xff]  }
 0x1e7   : > { %v2437_v36 = vunpack.c.l.bf16 %v2828_v32 }
 0x1ed   : > { %2745 = vmatmul.mubr.msk.bf16.gmra.mrb[28].mxu1 %vm307_vm2, %v2197_v40 }
 0x20c   : > { %v2718_v18 = vpop.f32.mrb[0].mxu1 }
 0x20d   : > { %v2307_v41 = vadd.f32 %v2718_v18, %v4295_v17  ;;  %v2298_v53 = vpop.f32.mrb[1].mxu1 }
 0x20e   : > { %v2299_v60 = vadd.f32 %v4295_v17, %v2298_v53  ;;  %v2719_v48 = vpop.f32.mrb[2].mxu1 }
 0x20f   : > { %v2459_v14 = vadd.f32 %v2427_v24, %v2307_v41  ;;  %v2310_v21 = vadd.f32 %v2719_v48, %v4295_v17  ;;  %v2301_v9 = vpop.f32.mrb[3].mxu1  ;;  %v2438_v24 = vunpack.c.h.bf16 %v2828_v32 }
 0x210   : > { %v2457_v49 = vadd.f32 %v2425_v16, %v2299_v60  ;;  %v2302_v0 = vadd.f32 %v4295_v17, %v2301_v9  ;;  %v2829_v60 = vld [vmem:[%s2923_s18 + $0x48] sm:$0xff]  }
 0x211   : > { %2491 = vst.msk [vmem:[%s4304_s22 + $0x10] sm:$0xff] %vm434_vm1, %v2459_v14  ;;  %v2460_v15 = vadd.f32 %v2428_v2, %v2310_v21  ;;  %v2443_v48 = vunpack.c.l.bf16 %v2829_v60  ;;  %v2830_v21 = vld [vmem:[%s2923_s18 + $0x40] sm:$0xff]  }
 0x212   : > { %2489 = vst.msk [vmem:[%s4304_s22] sm:$0xff] %vm434_vm1, %v2457_v49  ;;  %v2458_v11 = vadd.f32 %v2426_v45, %v2302_v0  ;;  %v2441_v9 = vunpack.c.l.bf16 %v2830_v21 }
 0x213   : > { %2492 = vst.msk [vmem:[%s4304_s22 + $0x18] sm:$0xff] %vm434_vm1, %v2460_v15  ;;  %v2444_v15 = vunpack.c.h.bf16 %v2829_v60 }
 0x214   : > { %2490 = vst.msk [vmem:[%s4304_s22 + $0x8] sm:$0xff] %vm434_vm1, %v2458_v11 }
 0x237   : > { %v2722_v47 = vpop.f32.mrb[4].mxu1 }
 0x238   : > { %v2323_v20 = vadd.f32 %v2722_v47, %v4295_v17  ;;  %v2314_v31 = vpop.f32.mrb[5].mxu1 }
 0x239   : > { %v2315_v25 = vadd.f32 %v4295_v17, %v2314_v31  ;;  %v2723_v55 = vpop.f32.mrb[6].mxu1 }
 0x23a   : > { %v2463_v61 = vadd.f32 %v2431_v42, %v2323_v20  ;;  %v2326_v62 = vadd.f32 %v2723_v55, %v4295_v17  ;;  %v2317_v19 = vpop.f32.mrb[7].mxu1  ;;  %v2442_v42 = vunpack.c.h.bf16 %v2830_v21  ;;  %v2831_v55 = vld [vmem:[%s2923_s18 + $0x58] sm:$0xff]  }
 0x23b   : > { %v2461_v23 = vadd.f32 %v2429_v8, %v2315_v25  ;;  %v2318_v3 = vadd.f32 %v4295_v17, %v2317_v19 }
 0x23c   : > { %2495 = vst.msk [vmem:[%s4304_s22 + $0x30] sm:$0xff] %vm434_vm1, %v2463_v61  ;;  %v2464_v12 = vadd.f32 %v2432_v56, %v2326_v62  ;;  %v2832_v62 = vld [vmem:[%s2923_s18 + $0x50] sm:$0xff]  }
 0x23d   : > { %2493 = vst.msk [vmem:[%s4304_s22 + $0x20] sm:$0xff] %vm434_vm1, %v2461_v23  ;;  %v2462_v29 = vadd.f32 %v2430_v43, %v2318_v3  ;;  %v2447_v43 = vunpack.c.l.bf16 %v2831_v55  ;;  %v2445_v19 = vunpack.c.l.bf16 %v2832_v62 }
 0x23e   : > { %2496 = vst.msk [vmem:[%s4304_s22 + $0x38] sm:$0xff] %vm434_vm1, %v2464_v12  ;;  %v2448_v12 = vunpack.c.h.bf16 %v2831_v55 }
 0x23f   : > { %2494 = vst.msk [vmem:[%s4304_s22 + $0x28] sm:$0xff] %vm434_vm1, %v2462_v29 }
 0x264   : > { %v2726_v44 = vpop.f32.mrb[8].mxu1 }
 0x265   : > { %v2339_v58 = vadd.f32 %v2726_v44, %v4295_v17  ;;  %v2330_v22 = vpop.f32.mrb[9].mxu1 }
 0x266   : > { %v2331_v27 = vadd.f32 %v4295_v17, %v2330_v22  ;;  %v2727_v37 = vpop.f32.mrb[10].mxu1 }
 0x267   : > { %v2467_v38 = vadd.f32 %v2435_v33, %v2339_v58  ;;  %v2342_v50 = vadd.f32 %v2727_v37, %v4295_v17  ;;  %v2333_v54 = vpop.f32.mrb[11].mxu1  ;;  %v2446_v33 = vunpack.c.h.bf16 %v2832_v62  ;;  %v2833_v37 = vld [vmem:[%s2923_s18 + $0x68] sm:$0xff]  }
 0x268   : > { %v2465_v10 = vadd.f32 %v2433_v35, %v2331_v27  ;;  %v2334_v28 = vadd.f32 %v4295_v17, %v2333_v54 }
 0x269   : > { %2499 = vst.msk [vmem:[%s4304_s22 + $0x50] sm:$0xff] %vm434_vm1, %v2467_v38  ;;  %v2468_v39 = vadd.f32 %v2436_v4, %v2342_v50  ;;  %v2834_v50 = vld [vmem:[%s2923_s18 + $0x60] sm:$0xff]  }
 0x26a   : > { %2497 = vst.msk [vmem:[%s4304_s22 + $0x40] sm:$0xff] %vm434_vm1, %v2465_v10  ;;  %v2466_v52 = vadd.f32 %v2434_v59, %v2334_v28  ;;  %v2451_v59 = vunpack.c.l.bf16 %v2833_v37  ;;  %v2449_v54 = vunpack.c.l.bf16 %v2834_v50 }
 0x26b   : > { %2500 = vst.msk [vmem:[%s4304_s22 + $0x58] sm:$0xff] %vm434_vm1, %v2468_v39  ;;  %v2452_v39 = vunpack.c.h.bf16 %v2833_v37 }
 0x26c   : > { %2498 = vst.msk [vmem:[%s4304_s22 + $0x48] sm:$0xff] %vm434_vm1, %v2466_v52 }
 0x287   : > { %v2730_v7 = vpop.f32.mrb[12].mxu1 }
 0x288   : > { %v2355_v30 = vadd.f32 %v2730_v7, %v4295_v17  ;;  %v2346_v34 = vpop.f32.mrb[13].mxu1 }
 0x289   : > { %v2347_v40 = vadd.f32 %v4295_v17, %v2346_v34  ;;  %v2731_v57 = vpop.f32.mrb[14].mxu1 }
 0x28a   : > { %v2471_v5 = vadd.f32 %v2439_v51, %v2355_v30  ;;  %v2358_v16 = vadd.f32 %v2731_v57, %v4295_v17  ;;  %v2349_v18 = vpop.f32.mrb[15].mxu1  ;;  %v2450_v51 = vunpack.c.h.bf16 %v2834_v50  ;;  %v2835_v57 = vld [vmem:[%s2923_s18 + $0x78] sm:$0xff]  }
 0x28b   : > { %v2469_v41 = vadd.f32 %v2437_v36, %v2347_v40  ;;  %v2350_v53 = vadd.f32 %v4295_v17, %v2349_v18 }
 0x28c   : > { %2503 = vst.msk [vmem:[%s4304_s22 + $0x70] sm:$0xff] %vm434_vm1, %v2471_v5  ;;  %v2472_v2 = vadd.f32 %v2440_v1, %v2358_v16  ;;  %v2836_v16 = vld [vmem:[%s2923_s18 + $0x70] sm:$0xff]  }
 0x28d   : > { %2501 = vst.msk [vmem:[%s4304_s22 + $0x60] sm:$0xff] %vm434_vm1, %v2469_v41  ;;  %v2470_v45 = vadd.f32 %v2438_v24, %v2350_v53  ;;  %v2455_v24 = vunpack.c.l.bf16 %v2835_v57  ;;  %v2453_v18 = vunpack.c.l.bf16 %v2836_v16 }
 0x28e   : > { %2504 = vst.msk [vmem:[%s4304_s22 + $0x78] sm:$0xff] %vm434_vm1, %v2472_v2  ;;  %v2456_v2 = vunpack.c.h.bf16 %v2835_v57 }
 0x28f   : > { %2502 = vst.msk [vmem:[%s4304_s22 + $0x68] sm:$0xff] %vm434_vm1, %v2470_v45 }
 0x2a7   : > { %v2734_v14 = vpop.f32.mrb[16].mxu1 }
 0x2a8   : > { %v2371_v49 = vadd.f32 %v2734_v14, %v4295_v17  ;;  %v2362_v0 = vpop.f32.mrb[17].mxu1 }
 0x2a9   : > { %v2363_v11 = vadd.f32 %v4295_v17, %v2362_v0  ;;  %v2735_v6 = vpop.f32.mrb[18].mxu1 }
 0x2aa   : > { %v2475_v47 = vadd.f32 %v2443_v48, %v2371_v49  ;;  %v2374_v13 = vadd.f32 %v2735_v6, %v4295_v17  ;;  %v2365_v8 = vpop.f32.mrb[19].mxu1  ;;  %v2454_v48 = vunpack.c.h.bf16 %v2836_v16 }
 0x2ab   : > { %v2473_v20 = vadd.f32 %v2441_v9, %v2363_v11  ;;  %v2366_v31 = vadd.f32 %v4295_v17, %v2365_v8 }
 0x2ac   : > { %2507 = vst.msk [vmem:[%s4304_s22 + $0x90] sm:$0xff] %vm434_vm1, %v2475_v47  ;;  %v2476_v56 = vadd.f32 %v2444_v15, %v2374_v13 }
 0x2ad   : > { %2505 = vst.msk [vmem:[%s4304_s22 + $0x80] sm:$0xff] %vm434_vm1, %v2473_v20  ;;  %v2474_v25 = vadd.f32 %v2442_v42, %v2366_v31 }
 0x2ae   : > { %2508 = vst.msk [vmem:[%s4304_s22 + $0x98] sm:$0xff] %vm434_vm1, %v2476_v56 }
 0x2af   : > { %2506 = vst.msk [vmem:[%s4304_s22 + $0x88] sm:$0xff] %vm434_vm1, %v2474_v25 }
 0x2b0   : > { %v2738_v61 = vpop.f32.mrb[20].mxu1 }
 0x2b1   : > { %v2387_v23 = vadd.f32 %v2738_v61, %v4295_v17  ;;  %v2378_v3 = vpop.f32.mrb[21].mxu1 }
 0x2b2   : > { %v2379_v29 = vadd.f32 %v4295_v17, %v2378_v3  ;;  %v2739_v26 = vpop.f32.mrb[22].mxu1 }
 0x2b3   : > { %v2479_v44 = vadd.f32 %v2447_v43, %v2387_v23  ;;  %v2390_v46 = vadd.f32 %v2739_v26, %v4295_v17  ;;  %v2381_v35 = vpop.f32.mrb[23].mxu1 }
 0x2b4   : > { %v2477_v58 = vadd.f32 %v2445_v19, %v2379_v29  ;;  %v2382_v22 = vadd.f32 %v4295_v17, %v2381_v35 }
 0x2b5   : > { %2511 = vst.msk [vmem:[%s4304_s22 + $0xb0] sm:$0xff] %vm434_vm1, %v2479_v44  ;;  %v2480_v4 = vadd.f32 %v2448_v12, %v2390_v46 }
 0x2b6   : > { %2509 = vst.msk [vmem:[%s4304_s22 + $0xa0] sm:$0xff] %vm434_vm1, %v2477_v58  ;;  %v2478_v27 = vadd.f32 %v2446_v33, %v2382_v22 }
 0x2b7   : > { %2512 = vst.msk [vmem:[%s4304_s22 + $0xb8] sm:$0xff] %vm434_vm1, %v2480_v4 }
 0x2b8   : > { %2510 = vst.msk [vmem:[%s4304_s22 + $0xa8] sm:$0xff] %vm434_vm1, %v2478_v27  ;;  %v2742_v38 = vpop.f32.mrb[24].mxu1 }
 0x2b9   : > { %v2403_v10 = vadd.f32 %v2742_v38, %v4295_v17  ;;  %v2394_v28 = vpop.f32.mrb[25].mxu1 }
 0x2ba   : > { %v2395_v52 = vadd.f32 %v4295_v17, %v2394_v28  ;;  %v2743_v63 = vpop.f32.mrb[26].mxu1 }
 0x2bb   : > { %v2483_v7 = vadd.f32 %v2451_v59, %v2403_v10  ;;  %v2406_v32 = vadd.f32 %v2743_v63, %v4295_v17  ;;  %v2397_v36 = vpop.f32.mrb[27].mxu1 }
 0x2bc   : > { %v2481_v30 = vadd.f32 %v2449_v54, %v2395_v52  ;;  %v2398_v34 = vadd.f32 %v4295_v17, %v2397_v36 }
 0x2bd   : > { %2515 = vst.msk [vmem:[%s4304_s22 + $0xd0] sm:$0xff] %vm434_vm1, %v2483_v7  ;;  %v2484_v1 = vadd.f32 %v2452_v39, %v2406_v32 }
 0x2be   : > { %2513 = vst.msk [vmem:[%s4304_s22 + $0xc0] sm:$0xff] %vm434_vm1, %v2481_v30  ;;  %v2482_v40 = vadd.f32 %v2450_v51, %v2398_v34 }
 0x2bf   : > { %2516 = vst.msk [vmem:[%s4304_s22 + $0xd8] sm:$0xff] %vm434_vm1, %v2484_v1 }
 0x2c0   : > { %2514 = vst.msk [vmem:[%s4304_s22 + $0xc8] sm:$0xff] %vm434_vm1, %v2482_v40  ;;  %v2746_v5 = vpop.f32.mrb[28].mxu1 }
 0x2c1   : > { %v2419_v41 = vadd.f32 %v2746_v5, %v4295_v17  ;;  %v2410_v53 = vpop.f32.mrb[29].mxu1 }
 0x2c2   : > { %v2411_v45 = vadd.f32 %v4295_v17, %v2410_v53  ;;  %v2747_v60 = vpop.f32.mrb[30].mxu1 }
 0x2c3   : > { %v2487_v14 = vadd.f32 %v2455_v24, %v2419_v41  ;;  %v2422_v21 = vadd.f32 %v2747_v60, %v4295_v17  ;;  %v2413_v9 = vpop.f32.mrb[31].mxu1 }
 0x2c4   : > { %v2485_v49 = vadd.f32 %v2453_v18, %v2411_v45  ;;  %v2414_v0 = vadd.f32 %v4295_v17, %v2413_v9 }
 0x2c5   : > { %2519 = vst.msk [vmem:[%s4304_s22 + $0xf0] sm:$0xff] %vm434_vm1, %v2487_v14  ;;  %v2488_v15 = vadd.f32 %v2456_v2, %v2422_v21 }
 0x2c6   : > { %2517 = vst.msk [vmem:[%s4304_s22 + $0xe0] sm:$0xff] %vm434_vm1, %v2485_v49  ;;  %v2486_v11 = vadd.f32 %v2454_v48, %v2414_v0 }
 0x2c7   : > { %2520 = vst.msk [vmem:[%s4304_s22 + $0xf8] sm:$0xff] %vm434_vm1, %v2488_v15 }
 0x2c8   : > { %2518 = vst.msk [vmem:[%s4304_s22 + $0xe8] sm:$0xff] %vm434_vm1, %v2486_v11 }
 0x2c9 PF: > { %s18_s27 = sadd.s32 1, %s2843_s27  }
 0x2ca   : > { %p15_p4 = scmp.ge.s32.totalorder %s18_s27, 4  }
 0x2cc   :  { %17 = sbr.rel (!%p15_p4) target bundleno = 1 (0x1), region = 82 }

</bundles_post_ra>
